<compile_context>
chip_gen: v7x
topology: tpu7x:2x2x1
jax: 0.10.0
libtpu: 0.0.40
codegen_flags: <defaults>
</compile_context>

<pallas_src>
import jax
import jax.numpy as jnp
from jax.experimental import pallas as pl
from jax.experimental.pallas import tpu as pltpu


def _make_ppi_kernel(n_hid: int, pair_tile: int):
    T = pair_tile

    def kernel(b_ref, k_ref, BwT_ref, X_ref, G_ref, c_ref, out_ref):
        # X_ref: (1, N, 2T) — lanes [0:T] are feat1 columns, lanes [T:2T] are feat2 columns.
        x = X_ref[0]                                   # (N, 2T) f32
        initial = x
        for l in range(n_hid):                         # static, small (unrolled)
            # column form of  h_row = x_row @ Bw[l]:  h_col = Bw[l]^T @ x_col
            h = jnp.dot(BwT_ref[l], x, preferred_element_type=jnp.float32) + b_ref[l]
            if l < n_hid - 1:                          # activation = relu except last layer
                h = jnp.maximum(h, 0.0)
            # TODO(synk): dropout omitted (eval-mode semantics => identity)
            x = h + initial                            # residual add of `initial`

        x1 = x[:, :T]                                  # (N, T)
        x2 = x[:, T:]                                  # (N, T)
        # Collapsed Linear head + <y1, y2>:  s[t] = x1_t^T G x2_t + (x1_t + x2_t)^T c + k
        z = jnp.dot(G_ref[...], x2, preferred_element_type=jnp.float32)     # (N, T)
        v = z * x1 + (x1 + x2) * c_ref[...]                                 # (N, T)
        s = jnp.sum(v, axis=0, keepdims=True) + k_ref[0]                    # (1, T) lane-dense
        out_ref[0] = jax.nn.sigmoid(s)

    return kernel


def ppi_forward_pairs(B, w, b, feats, Wnet, bnet, pair_tile=128):
    """Batched PPIModel forward for P (feat1, feat2) pairs.

    B:     (R, N, N)  dense typed adjacency with per-edge norm folded in
    w:     (L, R)     effective scalar relation weight per layer (basis decomposition)
    b:     (L,)       per-layer RelGraphConv bias (out_feat = 1)
    feats: (P, 2, N)  P pairs of node-feature row vectors
    Wnet:  (N, 1024)  Linear weight, pre-transposed
    bnet:  (1, 1024)  Linear bias
    returns (P, 1)    sigmoid(<net(x1), net(x2)>) per pair
    """
    num_rels, N, _ = B.shape
    n_hid = w.shape[0]
    P = feats.shape[0]

    T = pair_tile
    P_pad = ((P + T - 1) // T) * T
    if P_pad != P:
        feats = jnp.concatenate(
            [feats, jnp.zeros((P_pad - P, 2, N), feats.dtype)], axis=0)
    n_tiles = P_pad // T

    hi = jax.lax.Precision.HIGHEST
    # Collapse the head once per weight set (outside the kernel, high precision).
    G = jnp.dot(Wnet, Wnet.T, precision=hi)            # (N, N), symmetric
    c_col = jnp.dot(Wnet, bnet.T, precision=hi)        # (N, 1)
    k = jnp.sum(bnet * bnet).reshape(1)                # (1,)

    # Per-layer combined adjacency, transposed for the column (features-on-sublanes) layout:
    #   BwT[l] = (sum_r w[l, r] * B[r])^T
    BwT = jnp.einsum('lr,rnm->lmn', w, B, precision=hi)    # (n_hid, N, N)

    # Pairs-on-lanes layout: tile g is an (N, 2T) slab, lanes = [feat1 of T pairs | feat2 of T pairs].
    feats_t = (feats.reshape(n_tiles, T, 2, N)
                    .transpose(0, 3, 2, 1)
                    .reshape(n_tiles, N, 2 * T))

    out = pl.pallas_call(
        _make_ppi_kernel(n_hid, T),
        out_shape=jax.ShapeDtypeStruct((n_tiles, 1, T), jnp.float32),
        grid=(n_tiles,),
        in_specs=[
            pl.BlockSpec(memory_space=pltpu.MemorySpace.SMEM),       # b (L,)
            pl.BlockSpec(memory_space=pltpu.MemorySpace.SMEM),       # k (1,)
            pl.BlockSpec((n_hid, N, N), lambda g: (0, 0, 0)),        # BwT (VMEM-resident)
            pl.BlockSpec((1, N, 2 * T), lambda g: (g, 0, 0)),        # feats tile (streamed)
            pl.BlockSpec((N, N), lambda g: (0, 0)),                  # G (VMEM-resident)
            pl.BlockSpec((N, 1), lambda g: (0, 0)),                  # c (VMEM-resident)
        ],
        out_specs=pl.BlockSpec((1, 1, T), lambda g: (g, 0, 0)),
        compiler_params=pltpu.CompilerParams(
            dimension_semantics=("parallel",)),
    )(b, k, BwT, feats_t, G, c_col)
    return out.reshape(P_pad, 1)[:P]


def _reference(B, w, b, feats, Wnet, bnet):
    """Pure-JAX reference of the original module math (vectorized over pairs)."""
    hi = jax.lax.Precision.HIGHEST
    n_hid, num_rels = w.shape
    x = feats                                           # (P, 2, N)
    initial = x
    for l in range(n_hid):
        h = jnp.einsum('r,pbn,rnm->pbm', w[l], x, B, precision=hi) + b[l]
        if l < n_hid - 1:
            h = jnp.maximum(h, 0.0)
        x = h + initial
    y = jnp.einsum('pbn,nk->pbk', x, Wnet, precision=hi) + bnet   # (P, 2, 1024)
    s = jnp.sum(y[:, 0] * y[:, 1], axis=-1, keepdims=True)        # (P, 1)
    return jax.nn.sigmoid(s)


if __name__ == "__main__":
    # ---- model hyper-parameters (small, consistent with the module) ----
    num_nodes = 128
    num_rels = 4
    num_bases = 2
    n_hid = 3
    num_edges = 512
    hid_out = 1024          # nn.Linear(num_nodes, 1024)
    num_pairs = 256         # pairs batched over the grid (2 tiles of 128 -> 2 parallel steps)
    pair_tile = 128

    key = jax.random.PRNGKey(0)
    ks = jax.random.split(key, 10)

    # ---- synthetic graph: random typed edges + 1/in-degree edge norm ----
    src = jax.random.randint(ks[0], (num_edges,), 0, num_nodes)
    dst = jax.random.randint(ks[1], (num_edges,), 0, num_nodes)
    etype = jax.random.randint(ks[2], (num_edges,), 0, num_rels)
    in_deg = jnp.zeros((num_nodes,), jnp.float32).at[dst].add(1.0)
    norm = 1.0 / jnp.maximum(in_deg[dst], 1.0)
    B = jnp.zeros((num_rels, num_nodes, num_nodes), jnp.float32).at[etype, src, dst].add(norm)

    # ---- RGCN parameters (basis decomposition; in_feat = out_feat = 1) ----
    basis_w = 0.1 * jax.random.normal(ks[3], (n_hid, num_bases), jnp.float32)
    w_comp = 0.1 * jax.random.normal(ks[4], (n_hid, num_rels, num_bases), jnp.float32)
    # effective scalar weight per (layer, relation):  W_r = sum_b w_comp[r,b] * basis[b]
    w_eff = jnp.einsum('lrb,lb->lr', w_comp, basis_w)              # (n_hid, num_rels)
    b_eff = 0.01 * jax.random.normal(ks[5], (n_hid,), jnp.float32)

    # ---- Linear head parameters ----
    W_lin = 0.05 * jax.random.normal(ks[6], (hid_out, num_nodes), jnp.float32)
    b_lin = 0.01 * jax.random.normal(ks[7], (hid_out,), jnp.float32)
    Wnet = jnp.asarray(W_lin.T)            # (N, 1024)
    bnet = b_lin[None, :]                  # (1, 1024)

    # ---- node features: P pairs, each branch a (1, N) row -> (P, 2, N) ----
    feats = jax.random.normal(ks[8], (num_pairs, 2, num_nodes), jnp.float32)

    out = ppi_forward_pairs(B, w_eff, b_eff, feats, Wnet, bnet, pair_tile=pair_tile)
    out = jax.block_until_ready(out)

    ref = _reference(B, w_eff, b_eff, feats, Wnet, bnet)
    assert out.shape == (num_pairs, 1)
    assert jnp.allclose(out, ref, rtol=1e-3, atol=1e-4), float(jnp.abs(out - ref).max())

    print("KERNEL_OK")
</pallas_src>

<mosaic_0001>
module attributes {stable_mosaic.version = 11 : i64} {
  func.func @kernel(%arg0: i32, %arg1: memref<3xf32, #tpu.memory_space<smem>>, %arg2: memref<1xf32, #tpu.memory_space<smem>>, %arg3: memref<3x128x128xf32, #tpu.memory_space<vmem>>, %arg4: memref<1x128x256xf32, #tpu.memory_space<vmem>>, %arg5: memref<128x128xf32, #tpu.memory_space<vmem>>, %arg6: memref<128x1xf32, #tpu.memory_space<vmem>>, %arg7: memref<1x1x128xf32, #tpu.memory_space<vmem>>) attributes {dimension_semantics = [#tpu.dimension_semantics<parallel>], iteration_bounds = array<i64: 2>, scalar_prefetch = 0 : i64, scratch_operands = 0 : i64, tpu.core_type = #tpu.core_type<tc>, window_params = [{transform_indices = @transform_0, window_bounds = array<i64: 3>}, {transform_indices = @transform_1, window_bounds = array<i64: 1>}, {pipeline_mode = #tpu.pipeline_mode<synchronous>, transform_indices = @transform_2, window_bounds = array<i64: 3, 128, 128>}, {transform_indices = @transform_3, window_bounds = array<i64: 1, 128, 256>}, {pipeline_mode = #tpu.pipeline_mode<synchronous>, transform_indices = @transform_4, window_bounds = array<i64: 128, 128>}, {pipeline_mode = #tpu.pipeline_mode<synchronous>, transform_indices = @transform_5, window_bounds = array<i64: 128, 1>}, {transform_indices = @transform_6, window_bounds = array<i64: 1, 1, 128>}]} {
    %c0 = arith.constant 0 : index
    %c0_0 = arith.constant 0 : index
    %c0_1 = arith.constant 0 : index
    %0 = vector.load %arg4[%c0, %c0_0, %c0_1] : memref<1x128x256xf32, #tpu.memory_space<vmem>>, vector<1x128x256xf32>
    %1 = vector.shape_cast %0 : vector<1x128x256xf32> to vector<128x256xf32>
    %c0_2 = arith.constant 0 : index
    %c0_3 = arith.constant 0 : index
    %c0_4 = arith.constant 0 : index
    %2 = vector.load %arg3[%c0_2, %c0_3, %c0_4] : memref<3x128x128xf32, #tpu.memory_space<vmem>>, vector<1x128x128xf32>
    %3 = vector.shape_cast %2 : vector<1x128x128xf32> to vector<128x128xf32>
    %cst = arith.constant dense<0.000000e+00> : vector<128x256xf32>
    %4 = tpu.matmul %3, %1, %cst {dimension_numbers = #tpu.dot_dimension_numbers<[1], [0], [0], [1], [0, 0, 1, 1], [], []>} : vector<128x128xf32>, vector<128x256xf32>, vector<128x256xf32> -> vector<128x256xf32>
    %c0_5 = arith.constant 0 : index
    %5 = memref.load %arg1[%c0_5] : memref<3xf32, #tpu.memory_space<smem>>
    %6 = vector.broadcast %5 : f32 to vector<128x256xf32>
    %7 = arith.addf %4, %6 : vector<128x256xf32>
    %cst_6 = arith.constant 0.000000e+00 : f32
    %8 = vector.broadcast %cst_6 : f32 to vector<128x256xf32>
    %9 = arith.maximumf %7, %8 : vector<128x256xf32>
    %10 = arith.addf %9, %1 : vector<128x256xf32>
    %c1 = arith.constant 1 : index
    %c0_7 = arith.constant 0 : index
    %c0_8 = arith.constant 0 : index
    %11 = vector.load %arg3[%c1, %c0_7, %c0_8] : memref<3x128x128xf32, #tpu.memory_space<vmem>>, vector<1x128x128xf32>
    %12 = vector.shape_cast %11 : vector<1x128x128xf32> to vector<128x128xf32>
    %cst_9 = arith.constant dense<0.000000e+00> : vector<128x256xf32>
    %13 = tpu.matmul %12, %10, %cst_9 {dimension_numbers = #tpu.dot_dimension_numbers<[1], [0], [0], [1], [0, 0, 1, 1], [], []>} : vector<128x128xf32>, vector<128x256xf32>, vector<128x256xf32> -> vector<128x256xf32>
    %c1_10 = arith.constant 1 : index
    %14 = memref.load %arg1[%c1_10] : memref<3xf32, #tpu.memory_space<smem>>
    %15 = vector.broadcast %14 : f32 to vector<128x256xf32>
    %16 = arith.addf %13, %15 : vector<128x256xf32>
    %cst_11 = arith.constant 0.000000e+00 : f32
    %17 = vector.broadcast %cst_11 : f32 to vector<128x256xf32>
    %18 = arith.maximumf %16, %17 : vector<128x256xf32>
    %19 = arith.addf %18, %1 : vector<128x256xf32>
    %c2 = arith.constant 2 : index
    %c0_12 = arith.constant 0 : index
    %c0_13 = arith.constant 0 : index
    %20 = vector.load %arg3[%c2, %c0_12, %c0_13] : memref<3x128x128xf32, #tpu.memory_space<vmem>>, vector<1x128x128xf32>
    %21 = vector.shape_cast %20 : vector<1x128x128xf32> to vector<128x128xf32>
    %cst_14 = arith.constant dense<0.000000e+00> : vector<128x256xf32>
    %22 = tpu.matmul %21, %19, %cst_14 {dimension_numbers = #tpu.dot_dimension_numbers<[1], [0], [0], [1], [0, 0, 1, 1], [], []>} : vector<128x128xf32>, vector<128x256xf32>, vector<128x256xf32> -> vector<128x256xf32>
    %c2_15 = arith.constant 2 : index
    %23 = memref.load %arg1[%c2_15] : memref<3xf32, #tpu.memory_space<smem>>
    %24 = vector.broadcast %23 : f32 to vector<128x256xf32>
    %25 = arith.addf %22, %24 : vector<128x256xf32>
    %26 = arith.addf %25, %1 : vector<128x256xf32>
    %27 = vector.extract_strided_slice %26 {offsets = [0, 0], sizes = [128, 128], strides = [1, 1]} : vector<128x256xf32> to vector<128x128xf32>
    %28 = vector.extract_strided_slice %26 {offsets = [0, 128], sizes = [128, 128], strides = [1, 1]} : vector<128x256xf32> to vector<128x128xf32>
    %c0_16 = arith.constant 0 : index
    %c0_17 = arith.constant 0 : index
    %29 = vector.load %arg5[%c0_16, %c0_17] : memref<128x128xf32, #tpu.memory_space<vmem>>, vector<128x128xf32>
    %cst_18 = arith.constant dense<0.000000e+00> : vector<128x128xf32>
    %30 = tpu.matmul %29, %28, %cst_18 {dimension_numbers = #tpu.dot_dimension_numbers<[1], [0], [0], [1], [0, 0, 1, 1], [], []>} : vector<128x128xf32>, vector<128x128xf32>, vector<128x128xf32> -> vector<128x128xf32>
    %31 = arith.mulf %30, %27 : vector<128x128xf32>
    %32 = arith.addf %27, %28 : vector<128x128xf32>
    %c0_19 = arith.constant 0 : index
    %c0_20 = arith.constant 0 : index
    %33 = vector.load %arg6[%c0_19, %c0_20] : memref<128x1xf32, #tpu.memory_space<vmem>>, vector<128x1xf32>
    %34 = vector.broadcast %33 : vector<128x1xf32> to vector<128x128xf32>
    %35 = arith.mulf %32, %34 : vector<128x128xf32>
    %36 = arith.addf %31, %35 : vector<128x128xf32>
    %cst_21 = arith.constant dense<0.000000e+00> : vector<128xf32>
    %37 = vector.multi_reduction <add>, %36, %cst_21 [0] : vector<128x128xf32> to vector<128xf32>
    %38 = vector.shape_cast %37 : vector<128xf32> to vector<1x128xf32>
    %c0_22 = arith.constant 0 : index
    %39 = memref.load %arg2[%c0_22] : memref<1xf32, #tpu.memory_space<smem>>
    %40 = vector.broadcast %39 : f32 to vector<1x128xf32>
    %41 = arith.addf %38, %40 : vector<1x128xf32>
    %42 = arith.negf %41 : vector<1x128xf32>
    %43 = math.exp %42 : vector<1x128xf32>
    %cst_23 = arith.constant 1.000000e+00 : f32
    %44 = vector.broadcast %cst_23 : f32 to vector<1x128xf32>
    %45 = arith.addf %44, %43 : vector<1x128xf32>
    %46 = arith.divf %44, %45 : vector<1x128xf32>
    %c0_24 = arith.constant 0 : index
    %c0_25 = arith.constant 0 : index
    %c0_26 = arith.constant 0 : index
    %47 = vector.load %arg7[%c0_24, %c0_25, %c0_26] : memref<1x1x128xf32, #tpu.memory_space<vmem>>, vector<1x1x128xf32>
    %48 = vector.shape_cast %47 : vector<1x1x128xf32> to vector<1x128xf32>
    %49 = vector.shape_cast %46 : vector<1x128xf32> to vector<1x1x128xf32>
    tpu.vector_store %arg7[%c0_24, %c0_25, %c0_26], %49 {strides = array<i32>} : memref<1x1x128xf32, #tpu.memory_space<vmem>>, vector<1x1x128xf32>,
    return
  }
  func.func @transform_0(%arg0: i32) -> i32 {
    %c0_i32 = arith.constant 0 : i32
    %c0_i32_0 = arith.constant 0 : i32
    return %c0_i32 : i32
  }
  func.func @transform_1(%arg0: i32) -> i32 {
    %c0_i32 = arith.constant 0 : i32
    %c0_i32_0 = arith.constant 0 : i32
    return %c0_i32 : i32
  }
  func.func @transform_2(%arg0: i32) -> (i32, i32, i32) {
    %c0_i32 = arith.constant 0 : i32
    %c0_i32_0 = arith.constant 0 : i32
    %c0_i32_1 = arith.constant 0 : i32
    %c0_i32_2 = arith.constant 0 : i32
    return %c0_i32, %c0_i32_0, %c0_i32_1 : i32, i32, i32
  }
  func.func @transform_3(%arg0: i32) -> (i32, i32, i32) {
    %c0_i32 = arith.constant 0 : i32
    %c0_i32_0 = arith.constant 0 : i32
    %c0_i32_1 = arith.constant 0 : i32
    return %arg0, %c0_i32, %c0_i32_0 : i32, i32, i32
  }
  func.func @transform_4(%arg0: i32) -> (i32, i32) {
    %c0_i32 = arith.constant 0 : i32
    %c0_i32_0 = arith.constant 0 : i32
    %c0_i32_1 = arith.constant 0 : i32
    return %c0_i32, %c0_i32_0 : i32, i32
  }
  func.func @transform_5(%arg0: i32) -> (i32, i32) {
    %c0_i32 = arith.constant 0 : i32
    %c0_i32_0 = arith.constant 0 : i32
    %c0_i32_1 = arith.constant 0 : i32
    return %c0_i32, %c0_i32_0 : i32, i32
  }
  func.func @transform_6(%arg0: i32) -> (i32, i32, i32) {
    %c0_i32 = arith.constant 0 : i32
    %c0_i32_0 = arith.constant 0 : i32
    %c0_i32_1 = arith.constant 0 : i32
    return %arg0, %c0_i32, %c0_i32_0 : i32, i32, i32
  }
}

</mosaic_0001>

<bundles_post_ra>
// kernel: tpu_custom_call.1
= control target key start
LH: loop header
LB: loop body
LE: loop exit
PB: predicated region body
PF: predicated region fallthrough
CT: control target
= control target key end

     0   :  { %s2834_s0 = inlined_call_operand.vmem [shape: f32[3], index: 0, kind: input, shape index: {}]   ;;  %s2835_s1 = inlined_call_operand.<no memory space> [shape: f32[1], index: 1, kind: input, shape index: {}]   ;;  %s2836_s2 = inlined_call_operand.hbm [shape: f32[3,128,128], index: 2, kind: input, shape index: {}]   ;;  %s2837_s3 = inlined_call_operand.hbm [shape: f32[2,128,256], index: 3, kind: input, shape index: {}]   ;;  %s2838_s4 = inlined_call_operand.vmem [shape: f32[128,128], index: 4, kind: input, shape index: {}]   ;;  %s2839_s5 = inlined_call_operand.vmem [shape: f32[128,1], index: 5, kind: input, shape index: {}]   ;;  %s2840_s6 = inlined_call_operand.hbm [shape: f32[2,1,128], index: 6, kind: output, shape index: {}]  }
   0x1   :  { %2844 = sst [smem:[#allocation16_spill]] %s2834_s0 }
   0x2   :  { %11 = sst [smem:[#allocation2]] %s2835_s1 }
   0x3   :  { %12 = vsyncpa [#allocation6], 0 }
   0x4   :  { %13 = vsyncpa [#allocation4], 0 }
   0x5   :  { %14 = vsyncpa [#allocation9], 0 }
   0x6   :  { %16 = vsyncpa [#allocation9 + $0x1], 0 }
   0x7   :  { %17 = vsyncpa [#allocation5], 0 }
   0x8   :  { %19 = vsyncpa [#allocation5 + $0x1], 0  ;;  %s2028_s23 = smov 0   ;;  %s2030_s24 = smov 0  }
   0x9   :  { %s2032_s25 = smov 0   ;;  %s2034_s26 = smov 0  }
   0xa LB: > { %s2049_s1 = sadd.s32 4294967295, %s1978_s26   ;;  %s1485_s27 = sadd.s32 4294967294, %s1978_s26   ;;  %s1978_s26 = sphi %s2034_s26, %s2866_s26   ;;  %s1974_s25 = sphi %s2032_s25, %s2865_s25   ;;  %s1970_s24 = sphi %s2030_s24, %s2864_s24   ;;  %s1966_s23 = sphi %s2028_s23, %s2863_s23  }
   0xb   : > { %s2053_s28 = sadd.s32 1, %s1978_s26   ;;  %s95_s29 = sadd.s32 1, %s1974_s25 }
   0xc   : > { %s92_s30 = ssub.s32 %s1978_s26, %s2053_s28  ;;  %p102_p0 = scmp.ne.s32.totalorder %s1974_s25, %s1970_s24 }
   0xd   : > { %p93_p1 = scmp.eq.s32.totalorder %s92_s30, 0  ;;  %p103_p2 = scmp.eq.s32.totalorder %s1978_s26, 0 }
   0xe   : > { %p108_p3 = scmp.ne.s32.totalorder %s1970_s24, %s1966_s23  ;;  %p2841_p4 = scmp.eq.s32.totalorder %s2049_s1, 0 }
   0xf   : > { %s2065_s7 = scalar_select %p93_p1, %s1974_s25, %s95_s29  }
  0x10   : > { %p2067_p5 = por %p103_p2, %p102_p0  ;;  %p2073_p6 = por %p2841_p4, %p108_p3 }
  0x11   : > { %2845 = sst [smem:[#allocation15_spill]] %s2065_s7  ;;  %p174_p7 = scmp.eq.s32.totalorder %s2049_s1, 1 }
  0x12   : > { %s2847_s9 = scalar_select %p2073_p6, 1, 0 }
  0x13   : > { %p180_p8 = scmp.eq.s32.totalorder %s1485_s27, 1  ;;  %p1486_p9 = scmp.ge.s32.totalorder %s1978_s26, 1 }
  0x14   : > { %p187_p10 = scmp.lt.s32.totalorder %s1978_s26, 3  ;;  %p2080_p11 = por %p174_p7, %p102_p0 }
  0x15   : > { %p2084_p12 = por %p180_p8, %p108_p3  ;;  %s2851_s0 = sld [smem:[#allocation16_spill]] }
  0x16   : > { %s2848_s10 = scalar_select %p2080_p11, 1, 0 }
  0x17   : > { %s2849_s11 = scalar_select %p2084_p12, 1, 0 }
  0x18   : > { %p2088_p13 = pnand %p1486_p9, %p187_p10  ;;  %p1749_p2 = scmp.lt.s32.totalorder %s1978_s26, 2 }
  0x19   : > { %s1980_s18 = smov [#allocation7]  }
  0x1a   : > { %p1732_p1 = pneg %p2088_p13  ;;  %p2107_p3 = pnand %p1749_p2, %p2067_p5 }
  0x1b   : > { %s200_s15 = sshll.u32 %s2851_s0, 4  ;;  %s213_s19 = sshll.u32 %s1980_s18, 4  ;;  %s201_s15 = int_to_ptr.vmem [resolvable:$true] %s200_s15  ;;  %s2111_s19 = int_to_ptr.vmem [resolvable:$true] %s213_s19 }
  0x1c   : > { %p2101_p7 = pnand %p1732_p1, %p2841_p4  ;;  %s1831_s20 = scalar_lea.vmem %s201_s15, 16 }
  0x1d   : > { %p1832_p8 = scmp.ne.s32.totalorder %s201_s15, %s1831_s20  ;;  %p1839_p0 = scmp.lt.s32.totalorder %s201_s15, %s201_s15 }
  0x1e   : > { %p1833_p9 = pneg %p2101_p7  ;;  %p1840_p4 = scmp.lt.s32.totalorder %s1831_s20, %s1831_s20 }
  0x20   : > { %p1834_p10 = pnand %p1833_p9, %p1832_p8  ;;  %p1841_p12 = por %p1840_p4, %p1839_p0 }
  0x22   : > { %p1835_p1 = pneg %p1834_p10 }
  0x24   : > { %p1842_p11 = pnand %p1841_p12, %p1835_p1 }
  0x26   : > { %1845 = shalt.err (!%p1842_p11)
}
  0x27   : > { %s1981_s21 = smov [#allocation3]   ;;  %s233_s22 = sand.u32 1, %s1974_s25  }
  0x28   : > { %1735 = dma.vmem_to_smem (!%p2101_p7), %s201_s15, 16, %s1981_s21, [#allocation6]  }
  0x29   : > { %s1846_s30 = scalar_lea.hbm %s2836_s2, 6144 }
  0x2a   : > { %p1847_p5 = scmp.ne.s32.totalorder %s2836_s2, %s1846_s30  ;;  %p1853_p11 = scmp.lt.u32.totalorder %s1846_s30, %s2836_s2 }
  0x2c   : > { %p1849_p4 = pnand %p1847_p5, %p1833_p9 }
  0x2e   : > { %p1850_p12 = pneg %p1849_p4 }
  0x30   : > { %p1855_p0 = pnand %p1853_p11, %p1850_p12 }
  0x32   : > { %1858 = shalt.err (!%p1855_p0)
}
  0x33   : > { %s1859_s15 = scalar_lea.vmem %s2111_s19, 6144  ;;  %p1867_p1 = scmp.lt.s32.totalorder %s2111_s19, %s2111_s19 }
  0x34   : > { %p1860_p2 = scmp.ne.s32.totalorder %s2111_s19, %s1859_s15  ;;  %p1868_p5 = scmp.lt.s32.totalorder %s1859_s15, %s1859_s15 }
  0x36   : > { %p1862_p8 = pnand %p1860_p2, %p1833_p9  ;;  %p1869_p4 = por %p1868_p5, %p1867_p1 }
  0x38   : > { %p1863_p10 = pneg %p1862_p8 }
  0x3a   : > { %p1870_p6 = pnand %p1869_p4, %p1863_p10 }
  0x3c   : > { %1873 = shalt.err (!%p1870_p6)
}
  0x3d   : > { %s1982_s20 = smov 128   ;;  %s1983_s21 = smov 8  }
  0x3e   : > { %1738 = dma.hbm_to_vmem [thread:$0]  (!%p2101_p7), %s2836_s2, 6144, %s2111_s19, [#allocation4], %s1982_s20, %s1982_s20, %s1983_s21  }
  0x3f   : > { %s1490_s30 = sshll.u32 %s233_s22, 8  ;;  %s1503_s8 = sshll.u32 %s1978_s26, 12 }
  0x40   : > { %s2150_s18 = scalar_lea.hbm %s2837_s3, %s1503_s8  ;;  %s237_s15 = scalar_lea.vmem [#allocation8], %s1490_s30 }
  0x41   : > { %s244_s0 = sshll.u32 %s237_s15, 4  ;;  %s2154_s16 = scalar_lea.sflag [#allocation9], %s233_s22  ;;  %s2152_s0 = int_to_ptr.vmem [resolvable:$true] %s244_s0 }
  0x42   : > { %s1874_s7 = scalar_lea.hbm %s2150_s18, 4096  ;;  %p1876_p7 = pneg %p2107_p3 }
  0x43   : > { %p1875_p6 = scmp.ne.s32.totalorder %s2150_s18, %s1874_s7  ;;  %s1879_s21 = scalar_lea.hbm %s2837_s3, 8192 }
  0x44   : > { %p1880_p11 = scmp.lt.u32.totalorder %s2150_s18, %s2837_s3  ;;  %p1881_p0 = scmp.lt.u32.totalorder %s1879_s21, %s1874_s7 }
  0x45   : > { %p1877_p9 = pnand %p1876_p7, %p1875_p6  ;;  %p1883_p8 = scmp.lt.u32.totalorder %s1874_s7, %s2150_s18 }
  0x46   : > { %p1882_p2 = por %p1881_p0, %p1880_p11 }
  0x47   : > { %p1878_p12 = pneg %p1877_p9 }
  0x48   : > { %p1884_p10 = por %p1883_p8, %p1882_p2 }
  0x4a   : > { %p1885_p1 = pnand %p1884_p10, %p1878_p12 }
  0x4c   : > { %1888 = shalt.err (!%p1885_p1)
}
  0x4d   : > { %s1889_s22 = scalar_lea.vmem %s2152_s0, 4096  ;;  %s1984_s30 = smov [#allocation8]  }
  0x4e   : > { %p1890_p5 = scmp.ne.s32.totalorder %s2152_s0, %s1889_s22  ;;  %s1894_s8 = sshll.u32 %s1984_s30, 4  ;;  %s1895_s8 = int_to_ptr.vmem [resolvable:$false] %s1894_s8 }
  0x4f   : > { %s1896_s13 = scalar_lea.vmem %s1895_s8, 8192  ;;  %p1897_p9 = scmp.lt.s32.totalorder %s2152_s0, %s1895_s8 }
  0x50   : > { %p1892_p4 = pnand %p1890_p5, %p1876_p7  ;;  %p1898_p11 = scmp.lt.s32.totalorder %s1896_s13, %s1889_s22 }
  0x52   : > { %p1893_p6 = pneg %p1892_p4  ;;  %p1899_p0 = por %p1898_p11, %p1897_p9 }
  0x54   : > { %p1900_p2 = pnand %p1899_p0, %p1893_p6 }
  0x56   : > { %1903 = shalt.err (!%p1900_p2)
}
  0x57   : > { %s1985_s7 = smov 256   ;;  %s1986_s14 = smov 16  }
  0x58   : > { %1742 = dma.hbm_to_vmem [thread:$0]  (!%p2107_p3), %s2150_s18, 4096, %s2152_s0, %s2154_s16, %s1985_s7, %s1985_s7, %s1986_s14  }
  0x59   : > { %256 = sbr.rel (%p2088_p13) target bundleno = 1297 (0x511), region = 44  ;;  %p2854_p7 = scmp.eq.s32.totalorder (!%p2088_p13), %s2049_s1, 0 }
  0x60   : > { %1949 = dma.done.wait (%p2854_p7), [#allocation6], 16   ;;  %p2855_p12 = pmov %p2854_p7 }
  0x61   : > { %p2856_p8 = pmov %p2854_p7 }
  0x62   : > { %1951 = vsyncadd (%p2855_p12), [#allocation6], 4294967280 }
  0x63   : > { %1953 = dma.done.wait (%p2856_p8), [#allocation4], 6144   ;;  %p2857_p10 = pmov %p2854_p7 }
  0x64   : > { %s2193_s15 = sand.u32 1, %s1970_s24   ;;  %p2858_p13 = scmp.ne.s32.totalorder %s2847_s9, 0 }
  0x65   : > { %1955 = vsyncadd (%p2857_p10), [#allocation4], 4294961152  ;;  %s1496_s0 = sshll.u32 %s2193_s15, 8  ;;  %s267_s12 = scalar_lea.sflag [#allocation9], %s2193_s15 }
  0x66   : > { %s2197_s17 = scalar_lea.vmem [#allocation8], %s1496_s0 }
  0x67   : > { %1957 = dma.done.wait (%p2858_p13), %s267_s12, 4096  }
  0x68   : > { %1959 = vsyncadd (%p2858_p13), %s267_s12, 4294963200 }
  0x69   : > { %275 = sfence }
  0x6a   : > { %v2204_v0 = vld [vmem:[%s2197_s17 + $0x8] sm:$0xff]  ;;  %v2207_v1 = vld [vmem:[%s2197_s17 + $0x18] sm:$0xff]  ;;  %v2210_v2 = vld [vmem:[%s2197_s17] sm:$0xff]  ;;  %v1987_v7 = vmov 0.0   ;;  %s347_s9 = sld [smem:[#allocation3]]  ;;  %s1497_s18 = sld [smem:[#allocation3 + $0x1]] }
  0x6b   : > { %v1592_v3 = vpack.c.bf16 %v2207_v1, %v2204_v0  ;;  %v2215_v4 = vld [vmem:[%s2197_s17 + $0x10] sm:$0xff]  ;;  %v2218_v5 = vld [vmem:[%s2197_s17 + $0x28] sm:$0xff]  ;;  %v2221_v6 = vld [vmem:[%s2197_s17 + $0x38] sm:$0xff]  ;;  %413 = vmatprep.mubr.f32.mxu0 %v1987_v7  ;;  %657 = vmatprep.mubr.f32.mxu1 %v1987_v7  ;;  %s1498_s20 = sld [smem:[#allocation3 + $0x2]]  ;;  %s1500_s16 = sshll.u32 %s2049_s1, 4 }
  0x6c   : > { %v1594_v8 = vpack.c.bf16 %v2215_v4, %v2210_v2  ;;  %v1596_v9 = vpack.c.bf16 %v2221_v6, %v2218_v5  ;;  %v2230_v10 = vld [vmem:[%s2197_s17 + $0x20] sm:$0xff]  ;;  %v2233_v11 = vld [vmem:[%s2197_s17 + $0x30] sm:$0xff]  ;;  %v2236_v12 = vld [vmem:[%s2197_s17 + $0x48] sm:$0xff]  ;;  %s298_s19 = scalar_lea.vmem [#allocation10], %s2193_s15  ;;  %s2790_s29 = scalar_lea.hbm %s2840_s6, %s1500_s16 }
  0x6d   : > { %1593 = vmatprep.subr.bf16.mxu0 %v1592_v3  ;;  %v2239_v13 = vld [vmem:[%s2197_s17 + $0x58] sm:$0xff]  ;;  %v1598_v14 = vpack.c.bf16 %v2233_v11, %v2230_v10  ;;  %v2246_v16 = vld [vmem:[%s2197_s17 + $0x40] sm:$0xff]  ;;  %v2249_v17 = vld [vmem:[%s2197_s17 + $0x50] sm:$0xff]  ;;  %s1383_s22 = scalar_lea.sflag [#allocation5], %s2193_s15  ;;  %p2859_p1 = scmp.ne.s32.totalorder %s2848_s10, 0 }
  0x6e   : > { %1595 = vmatpush1.bf16.msra.mxu0 %v1594_v8  ;;  %v1600_v15 = vpack.c.bf16 %v2239_v13, %v2236_v12  ;;  %v2252_v18 = vld [vmem:[%s2197_s17 + $0x68] sm:$0xff]  ;;  %v2255_v19 = vld [vmem:[%s2197_s17 + $0x78] sm:$0xff]  ;;  %v1602_v20 = vpack.c.bf16 %v2249_v17, %v2246_v16  ;;  %v2262_v22 = vld [vmem:[%s2197_s17 + $0x60] sm:$0xff]  ;;  %s1989_s1 = smov [#allocation10]  }
  0x6f   : > { %1597 = vmatprep.subr.bf16.mxu0 %v1596_v9  ;;  %v1604_v21 = vpack.c.bf16 %v2255_v19, %v2252_v18  ;;  %v2265_v23 = vld [vmem:[%s2197_s17 + $0x70] sm:$0xff]  ;;  %v2268_v24 = vld [vmem:[%s2197_s17 + $0x88] sm:$0xff]  ;;  %v2271_v25 = vld [vmem:[%s2197_s17 + $0x98] sm:$0xff]  ;;  %s1908_s8 = sshll.u32 %s1989_s1, 4  ;;  %s1909_s8 = int_to_ptr.vmem [resolvable:$false] %s1908_s8 }
  0x70   : > { %v1606_v26 = vpack.c.bf16 %v2265_v23, %v2262_v22  ;;  %v1608_v27 = vpack.c.bf16 %v2271_v25, %v2268_v24  ;;  %v2278_v28 = vld [vmem:[%s2197_s17 + $0x80] sm:$0xff]  ;;  %v2281_v29 = vld [vmem:[%s2197_s17 + $0x90] sm:$0xff]  ;;  %v2284_v30 = vld [vmem:[%s2197_s17 + $0xa8] sm:$0xff]  ;;  %v2349_v8 = vstv %s347_s9 }
  0x71   : > { %v2287_v31 = vld [vmem:[%s2197_s17 + $0xb8] sm:$0xff]  ;;  %v1610_v32 = vpack.c.bf16 %v2281_v29, %v2278_v28  ;;  %v2294_v34 = vld [vmem:[%s2197_s17 + $0xa0] sm:$0xff]  ;;  %v2297_v35 = vld [vmem:[%s2197_s17 + $0xb0] sm:$0xff] }
  0x72   : > { %1599 = vmatpush1.bf16.msra.mxu0 %v1598_v14  ;;  %v1612_v33 = vpack.c.bf16 %v2287_v31, %v2284_v30  ;;  %v2300_v36 = vld [vmem:[%s2197_s17 + $0xc8] sm:$0xff]  ;;  %v2303_v37 = vld [vmem:[%s2197_s17 + $0xd8] sm:$0xff]  ;;  %v1614_v38 = vpack.c.bf16 %v2297_v35, %v2294_v34  ;;  %v2310_v40 = vld [vmem:[%s2197_s17 + $0xc0] sm:$0xff] }
  0x73   : > { %1601 = vmatprep.subr.bf16.mxu0 %v1600_v15  ;;  %v1616_v39 = vpack.c.bf16 %v2303_v37, %v2300_v36  ;;  %v2313_v41 = vld [vmem:[%s2197_s17 + $0xd0] sm:$0xff]  ;;  %v2316_v42 = vld [vmem:[%s2197_s17 + $0xe8] sm:$0xff]  ;;  %v2319_v43 = vld [vmem:[%s2197_s17 + $0xf8] sm:$0xff] }
  0x74   : > { %v1618_v44 = vpack.c.bf16 %v2313_v41, %v2310_v40  ;;  %v1620_v45 = vpack.c.bf16 %v2319_v43, %v2316_v42  ;;  %v2326_v46 = vld [vmem:[%s2197_s17 + $0xe0] sm:$0xff]  ;;  %v2329_v47 = vld [vmem:[%s2197_s17 + $0xf0] sm:$0xff]  ;;  %v332_v50 = vld [vmem:[#allocation7 + $0x8] sm:$0xff] }
  0x75   : > { %v1622_v48 = vpack.c.bf16 %v2329_v47, %v2326_v46  ;;  %v331_v49 = vld [vmem:[#allocation7] sm:$0xff]  ;;  %v333_v51 = vld [vmem:[#allocation7 + $0x10] sm:$0xff]  ;;  %v334_v52 = vld [vmem:[#allocation7 + $0x18] sm:$0xff] }
  0x76   : > { %1603 = vmatpush1.bf16.msra.mxu0 %v1602_v20  ;;  %v335_v53 = vld [vmem:[#allocation7 + $0x20] sm:$0xff]  ;;  %v336_v54 = vld [vmem:[#allocation7 + $0x28] sm:$0xff]  ;;  %v337_v55 = vld [vmem:[#allocation7 + $0x30] sm:$0xff] }
  0x77   : > { %1605 = vmatprep.subr.bf16.mxu0 %v1604_v21  ;;  %v338_v56 = vld [vmem:[#allocation7 + $0x38] sm:$0xff]  ;;  %v339_v57 = vld [vmem:[#allocation7 + $0x40] sm:$0xff]  ;;  %v340_v58 = vld [vmem:[#allocation7 + $0x48] sm:$0xff] }
  0x78   : > { %v341_v59 = vld [vmem:[#allocation7 + $0x50] sm:$0xff]  ;;  %v342_v60 = vld [vmem:[#allocation7 + $0x58] sm:$0xff]  ;;  %v343_v61 = vld [vmem:[#allocation7 + $0x60] sm:$0xff] }
  0x79   : > { %v344_v62 = vld [vmem:[#allocation7 + $0x68] sm:$0xff]  ;;  %v345_v63 = vld [vmem:[#allocation7 + $0x70] sm:$0xff]  ;;  %v346_v3 = vld [vmem:[#allocation7 + $0x78] sm:$0xff] }
  0x7a   : > { %1607 = vmatpush1.bf16.msra.mxu0 %v1606_v26 }
  0x7b   : > { %1609 = vmatprep.subr.bf16.mxu0 %v1608_v27 }
  0x7e   : > { %1611 = vmatpush1.bf16.msra.mxu0 %v1610_v32 }
  0x7f   : > { %1613 = vmatprep.subr.bf16.mxu0 %v1612_v33 }
  0x82   : > { %1615 = vmatpush1.bf16.msra.mxu0 %v1614_v38 }
  0x83   : > { %1617 = vmatprep.subr.bf16.mxu0 %v1616_v39 }
  0x86   : > { %1619 = vmatpush1.bf16.msra.mxu0 %v1618_v44 }
  0x87   : > { %1621 = vmatprep.subr.bf16.mxu0 %v1620_v45 }
  0x8a   : > { %1623 = vmatpush1.bf16.msra.mxu0 %v1622_v48 }
  0x8d   : > { %414 = vmatmul.mubr.f32.vlgmr.msra.gmra.mrb[0].mxu0 %v331_v49 }
  0x8e   : > { %419 = vmatprep.mubr.f32.mxu0 %v1987_v7 }
  0x91   : > { %420 = vmatmul.mubr.f32.gmra.mrb[2].mxu0 %v332_v50 }
  0x92   : > { %425 = vmatprep.mubr.f32.mxu0 %v1987_v7 }
  0x95   : > { %426 = vmatmul.mubr.f32.gmra.mrb[4].mxu0 %v333_v51 }
  0x96   : > { %431 = vmatprep.mubr.f32.mxu0 %v1987_v7 }
  0x99   : > { %432 = vmatmul.mubr.f32.gmra.mrb[6].mxu0 %v334_v52 }
  0x9a   : > { %437 = vmatprep.mubr.f32.mxu0 %v1987_v7 }
  0x9d   : > { %438 = vmatmul.mubr.f32.gmra.mrb[8].mxu0 %v335_v53 }
  0x9e   : > { %443 = vmatprep.mubr.f32.mxu0 %v1987_v7 }
  0xa1   : > { %444 = vmatmul.mubr.f32.gmra.mrb[10].mxu0 %v336_v54 }
  0xa2   : > { %449 = vmatprep.mubr.f32.mxu0 %v1987_v7 }
  0xa5   : > { %450 = vmatmul.mubr.f32.gmra.mrb[12].mxu0 %v337_v55 }
  0xa6   : > { %455 = vmatprep.mubr.f32.mxu0 %v1987_v7 }
  0xa9   : > { %456 = vmatmul.mubr.f32.gmra.mrb[14].mxu0 %v338_v56 }
  0xaa   : > { %461 = vmatprep.mubr.f32.mxu0 %v1987_v7 }
  0xad   : > { %462 = vmatmul.mubr.f32.gmra.mrb[16].mxu0 %v339_v57 }
  0xae   : > { %467 = vmatprep.mubr.f32.mxu0 %v1987_v7 }
  0xb1   : > { %468 = vmatmul.mubr.f32.gmra.mrb[18].mxu0 %v340_v58 }
  0xb2   : > { %473 = vmatprep.mubr.f32.mxu0 %v1987_v7 }
  0xb5   : > { %474 = vmatmul.mubr.f32.gmra.mrb[20].mxu0 %v341_v59 }
  0xb6   : > { %479 = vmatprep.mubr.f32.mxu0 %v1987_v7 }
  0xb9   : > { %480 = vmatmul.mubr.f32.gmra.mrb[22].mxu0 %v342_v60 }
  0xba   : > { %485 = vmatprep.mubr.f32.mxu0 %v1987_v7 }
  0xbd   : > { %486 = vmatmul.mubr.f32.gmra.mrb[24].mxu0 %v343_v61 }
  0xbe   : > { %491 = vmatprep.mubr.f32.mxu0 %v1987_v7 }
  0xc1   : > { %492 = vmatmul.mubr.f32.gmra.mrb[26].mxu0 %v344_v62 }
  0xc2   : > { %497 = vmatprep.mubr.f32.mxu0 %v1987_v7 }
  0xc5   : > { %498 = vmatmul.mubr.f32.gmra.mrb[28].mxu0 %v345_v63 }
  0xc6   : > { %503 = vmatprep.mubr.f32.mxu0 %v1987_v7 }
  0xc9   : > { %504 = vmatmul.mubr.f32.gmra.mrb[30].mxu0 %v346_v3 }
  0xca   : > { %901 = vmatprep.mubr.f32.mxu0 %v1987_v7 }
 0x160   : > { %v415_v9 = vpop.f32.mrb[0].mxu0 }
 0x161   : > { %v416_v14 = vadd.f32 %v415_v9, %v2349_v8  ;;  %v417_v15 = vpop.f32.mrb[1].mxu0 }
 0x162   : > { %v418_v20 = vadd.f32 %v417_v15, %v2349_v8 }
 0x163   : > { %v510_v26 = vmax.f32 %v416_v14, 0.0 }
 0x164   : > { %v421_v21 = vpop.f32.mrb[2].mxu0  ;;  %v511_v33 = vmax.f32 %v418_v20, 0.0 }
 0x165   : > { %v422_v27 = vadd.f32 %v421_v21, %v2349_v8  ;;  %v423_v32 = vpop.f32.mrb[3].mxu0  ;;  %v542_v48 = vadd.f32 %v510_v26, %v2210_v2 }
 0x166   : > { %v424_v38 = vadd.f32 %v423_v32, %v2349_v8  ;;  %v543_v53 = vadd.f32 %v511_v33, %v2204_v0 }
 0x167   : > { %v512_v39 = vmax.f32 %v422_v27, 0.0 }
 0x168   : > { %v513_v44 = vmax.f32 %v424_v38, 0.0  ;;  %v427_v45 = vpop.f32.mrb[4].mxu0 }
 0x169   : > { %v544_v49 = vadd.f32 %v512_v39, %v2215_v4  ;;  %v428_v50 = vadd.f32 %v427_v45, %v2349_v8  ;;  %v429_v51 = vpop.f32.mrb[5].mxu0 }
 0x16a   : > { %v430_v52 = vadd.f32 %v429_v51, %v2349_v8  ;;  %v545_v54 = vadd.f32 %v513_v44, %v2207_v1 }
 0x16b   : > { %v1626_v55 = vpack.c.bf16 %v544_v49, %v542_v48  ;;  %v514_v58 = vmax.f32 %v428_v50, 0.0 }
 0x16c   : > { %v433_v56 = vpop.f32.mrb[6].mxu0  ;;  %v1624_v57 = vpack.c.bf16 %v545_v54, %v543_v53  ;;  %v515_v61 = vmax.f32 %v430_v52, 0.0 }
 0x16d   : > { %v434_v59 = vadd.f32 %v433_v56, %v2349_v8  ;;  %v435_v60 = vpop.f32.mrb[7].mxu0  ;;  %v546_v14 = vadd.f32 %v514_v58, %v2230_v10 }
 0x16e   : > { %v436_v62 = vadd.f32 %v435_v60, %v2349_v8  ;;  %1625 = vmatprep.subr.bf16.mxu1 %v1624_v57  ;;  %v547_v26 = vadd.f32 %v515_v61, %v2218_v5 }
 0x16f   : > { %v516_v63 = vmax.f32 %v434_v59, 0.0  ;;  %1627 = vmatpush1.bf16.msra.mxu1 %v1626_v55 }
 0x170   : > { %v517_v3 = vmax.f32 %v436_v62, 0.0  ;;  %v439_v9 = vpop.f32.mrb[8].mxu0 }
 0x171   : > { %v548_v15 = vadd.f32 %v516_v63, %v2233_v11  ;;  %v440_v20 = vadd.f32 %v439_v9, %v2349_v8  ;;  %v441_v21 = vpop.f32.mrb[9].mxu0 }
 0x172   : > { %v549_v27 = vadd.f32 %v517_v3, %v2221_v6  ;;  %v442_v32 = vadd.f32 %v441_v21, %v2349_v8 }
 0x173   : > { %v1630_v33 = vpack.c.bf16 %v548_v15, %v546_v14  ;;  %v518_v44 = vmax.f32 %v440_v20, 0.0 }
 0x174   : > { %v445_v38 = vpop.f32.mrb[10].mxu0  ;;  %v1628_v39 = vpack.c.bf16 %v549_v27, %v547_v26  ;;  %v519_v49 = vmax.f32 %v442_v32, 0.0 }
 0x175   : > { %v446_v45 = vadd.f32 %v445_v38, %v2349_v8  ;;  %v447_v48 = vpop.f32.mrb[11].mxu0  ;;  %v550_v54 = vadd.f32 %v518_v44, %v2246_v16 }
 0x176   : > { %v448_v50 = vadd.f32 %v447_v48, %v2349_v8  ;;  %1629 = vmatprep.subr.bf16.mxu1 %v1628_v39  ;;  %v551_v58 = vadd.f32 %v519_v49, %v2236_v12 }
 0x177   : > { %v520_v51 = vmax.f32 %v446_v45, 0.0  ;;  %1631 = vmatpush1.bf16.msra.mxu1 %v1630_v33 }
 0x178   : > { %v521_v52 = vmax.f32 %v448_v50, 0.0  ;;  %v451_v53 = vpop.f32.mrb[12].mxu0 }
 0x179   : > { %v552_v55 = vadd.f32 %v520_v51, %v2249_v17  ;;  %v452_v56 = vadd.f32 %v451_v53, %v2349_v8  ;;  %v453_v57 = vpop.f32.mrb[13].mxu0 }
 0x17a   : > { %v553_v59 = vadd.f32 %v521_v52, %v2239_v13  ;;  %v454_v60 = vadd.f32 %v453_v57, %v2349_v8 }
 0x17b   : > { %v1634_v61 = vpack.c.bf16 %v552_v55, %v550_v54  ;;  %v522_v3 = vmax.f32 %v452_v56, 0.0 }
 0x17c   : > { %v457_v62 = vpop.f32.mrb[14].mxu0  ;;  %v1632_v63 = vpack.c.bf16 %v553_v59, %v551_v58  ;;  %v523_v15 = vmax.f32 %v454_v60, 0.0 }
 0x17d   : > { %v458_v9 = vadd.f32 %v457_v62, %v2349_v8  ;;  %v459_v14 = vpop.f32.mrb[15].mxu0  ;;  %v554_v32 = vadd.f32 %v522_v3, %v2262_v22 }
 0x17e   : > { %v460_v20 = vadd.f32 %v459_v14, %v2349_v8  ;;  %1633 = vmatprep.subr.bf16.mxu1 %v1632_v63  ;;  %v555_v44 = vadd.f32 %v523_v15, %v2252_v18 }
 0x17f   : > { %v524_v21 = vmax.f32 %v458_v9, 0.0  ;;  %1635 = vmatpush1.bf16.msra.mxu1 %v1634_v61 }
 0x180   : > { %v525_v26 = vmax.f32 %v460_v20, 0.0  ;;  %v463_v27 = vpop.f32.mrb[16].mxu0 }
 0x181   : > { %v556_v33 = vadd.f32 %v524_v21, %v2265_v23  ;;  %v464_v38 = vadd.f32 %v463_v27, %v2349_v8  ;;  %v465_v39 = vpop.f32.mrb[17].mxu0 }
 0x182   : > { %v557_v45 = vadd.f32 %v525_v26, %v2255_v19  ;;  %v466_v48 = vadd.f32 %v465_v39, %v2349_v8 }
 0x183   : > { %v1638_v49 = vpack.c.bf16 %v556_v33, %v554_v32  ;;  %v526_v52 = vmax.f32 %v464_v38, 0.0 }
 0x184   : > { %v469_v50 = vpop.f32.mrb[18].mxu0  ;;  %v1636_v51 = vpack.c.bf16 %v557_v45, %v555_v44  ;;  %v527_v55 = vmax.f32 %v466_v48, 0.0 }
 0x185   : > { %v470_v53 = vadd.f32 %v469_v50, %v2349_v8  ;;  %v471_v54 = vpop.f32.mrb[19].mxu0  ;;  %v558_v60 = vadd.f32 %v526_v52, %v2278_v28 }
 0x186   : > { %v472_v56 = vadd.f32 %v471_v54, %v2349_v8  ;;  %1637 = vmatprep.subr.bf16.mxu1 %v1636_v51  ;;  %v559_v3 = vadd.f32 %v527_v55, %v2268_v24 }
 0x187   : > { %v528_v57 = vmax.f32 %v470_v53, 0.0  ;;  %1639 = vmatpush1.bf16.msra.mxu1 %v1638_v49 }
 0x188   : > { %v529_v58 = vmax.f32 %v472_v56, 0.0  ;;  %v475_v59 = vpop.f32.mrb[20].mxu0 }
 0x189   : > { %v560_v61 = vadd.f32 %v528_v57, %v2281_v29  ;;  %v476_v62 = vadd.f32 %v475_v59, %v2349_v8  ;;  %v477_v63 = vpop.f32.mrb[21].mxu0 }
 0x18a   : > { %v561_v9 = vadd.f32 %v529_v58, %v2271_v25  ;;  %v478_v14 = vadd.f32 %v477_v63, %v2349_v8 }
 0x18b   : > { %v1642_v15 = vpack.c.bf16 %v560_v61, %v558_v60  ;;  %v530_v26 = vmax.f32 %v476_v62, 0.0 }
 0x18c   : > { %v481_v20 = vpop.f32.mrb[22].mxu0  ;;  %v1640_v21 = vpack.c.bf16 %v561_v9, %v559_v3  ;;  %v531_v33 = vmax.f32 %v478_v14, 0.0 }
 0x18d   : > { %v482_v27 = vadd.f32 %v481_v20, %v2349_v8  ;;  %v483_v32 = vpop.f32.mrb[23].mxu0  ;;  %v562_v48 = vadd.f32 %v530_v26, %v2294_v34 }
 0x18e   : > { %v484_v38 = vadd.f32 %v483_v32, %v2349_v8  ;;  %1641 = vmatprep.subr.bf16.mxu1 %v1640_v21  ;;  %v563_v52 = vadd.f32 %v531_v33, %v2284_v30 }
 0x18f   : > { %v532_v39 = vmax.f32 %v482_v27, 0.0  ;;  %1643 = vmatpush1.bf16.msra.mxu1 %v1642_v15 }
 0x190   : > { %v533_v44 = vmax.f32 %v484_v38, 0.0  ;;  %v487_v45 = vpop.f32.mrb[24].mxu0 }
 0x191   : > { %v564_v49 = vadd.f32 %v532_v39, %v2297_v35  ;;  %v488_v50 = vadd.f32 %v487_v45, %v2349_v8  ;;  %v489_v51 = vpop.f32.mrb[25].mxu0 }
 0x192   : > { %v565_v53 = vadd.f32 %v533_v44, %v2287_v31  ;;  %v490_v54 = vadd.f32 %v489_v51, %v2349_v8 }
 0x193   : > { %v1646_v55 = vpack.c.bf16 %v564_v49, %v562_v48  ;;  %v534_v58 = vmax.f32 %v488_v50, 0.0 }
 0x194   : > { %v493_v56 = vpop.f32.mrb[26].mxu0  ;;  %v1644_v57 = vpack.c.bf16 %v565_v53, %v563_v52  ;;  %v535_v61 = vmax.f32 %v490_v54, 0.0 }
 0x195   : > { %v494_v59 = vadd.f32 %v493_v56, %v2349_v8  ;;  %v495_v60 = vpop.f32.mrb[27].mxu0  ;;  %v566_v14 = vadd.f32 %v534_v58, %v2310_v40 }
 0x196   : > { %v496_v62 = vadd.f32 %v495_v60, %v2349_v8  ;;  %1645 = vmatprep.subr.bf16.mxu1 %v1644_v57  ;;  %v567_v26 = vadd.f32 %v535_v61, %v2300_v36  ;;  %v577_v60 = vld [vmem:[#allocation7 + $0x90] sm:$0xff]  ;;  %v578_v61 = vld [vmem:[#allocation7 + $0x98] sm:$0xff] }
 0x197   : > { %v536_v63 = vmax.f32 %v494_v59, 0.0  ;;  %1647 = vmatpush1.bf16.msra.mxu1 %v1646_v55  ;;  %v575_v59 = vld [vmem:[#allocation7 + $0x80] sm:$0xff] }
 0x198   : > { %v537_v3 = vmax.f32 %v496_v62, 0.0  ;;  %v499_v9 = vpop.f32.mrb[28].mxu0  ;;  %v579_v62 = vld [vmem:[#allocation7 + $0xa0] sm:$0xff] }
 0x199   : > { %v568_v15 = vadd.f32 %v536_v63, %v2313_v41  ;;  %v500_v20 = vadd.f32 %v499_v9, %v2349_v8  ;;  %v501_v21 = vpop.f32.mrb[29].mxu0  ;;  %v580_v63 = vld [vmem:[#allocation7 + $0xa8] sm:$0xff]  ;;  %v582_v9 = vld [vmem:[#allocation7 + $0xb8] sm:$0xff] }
 0x19a   : > { %v569_v27 = vadd.f32 %v537_v3, %v2303_v37  ;;  %v502_v32 = vadd.f32 %v501_v21, %v2349_v8  ;;  %v581_v3 = vld [vmem:[#allocation7 + $0xb0] sm:$0xff]  ;;  %v586_v21 = vld [vmem:[#allocation7 + $0xd8] sm:$0xff] }
 0x19b   : > { %v1650_v33 = vpack.c.bf16 %v568_v15, %v566_v14  ;;  %v538_v44 = vmax.f32 %v500_v20, 0.0  ;;  %v583_v14 = vld [vmem:[#allocation7 + $0xc0] sm:$0xff]  ;;  %v584_v15 = vld [vmem:[#allocation7 + $0xc8] sm:$0xff]  ;;  %v585_v20 = vld [vmem:[#allocation7 + $0xd0] sm:$0xff] }
 0x19c   : > { %v505_v38 = vpop.f32.mrb[30].mxu0  ;;  %v1648_v39 = vpack.c.bf16 %v569_v27, %v567_v26  ;;  %v539_v49 = vmax.f32 %v502_v32, 0.0  ;;  %v587_v26 = vld [vmem:[#allocation7 + $0xe0] sm:$0xff]  ;;  %v588_v27 = vld [vmem:[#allocation7 + $0xe8] sm:$0xff]  ;;  %v589_v32 = vld [vmem:[#allocation7 + $0xf0] sm:$0xff] }
 0x19d   : > { %v506_v45 = vadd.f32 %v505_v38, %v2349_v8  ;;  %v507_v48 = vpop.f32.mrb[31].mxu0  ;;  %v570_v53 = vadd.f32 %v538_v44, %v2326_v46  ;;  %v2430_v38 = vstv %s1497_s18  ;;  %s1372_s18 = sld [smem:[#allocation2]] }
 0x19e   : > { %v508_v50 = vadd.f32 %v507_v48, %v2349_v8  ;;  %1649 = vmatprep.subr.bf16.mxu1 %v1648_v39  ;;  %v571_v55 = vadd.f32 %v539_v49, %v2316_v42  ;;  %v576_v8 = vld [vmem:[#allocation7 + $0x88] sm:$0xff] }
 0x19f   : > { %v540_v51 = vmax.f32 %v506_v45, 0.0  ;;  %1651 = vmatpush1.bf16.msra.mxu1 %v1650_v33  ;;  %v590_v33 = vld [vmem:[#allocation7 + $0xf8] sm:$0xff] }
 0x1a0   : > { %v541_v52 = vmax.f32 %v508_v50, 0.0 }
 0x1a1   : > { %v572_v54 = vadd.f32 %v540_v51, %v2329_v47 }
 0x1a2   : > { %v573_v56 = vadd.f32 %v541_v52, %v2319_v43 }
 0x1a3   : > { %v1654_v57 = vpack.c.bf16 %v572_v54, %v570_v53 }
 0x1a4   : > { %v1652_v58 = vpack.c.bf16 %v573_v56, %v571_v55  ;;  %v1223_v55 = vld [vmem:[%s2839_s5] sm:$0xff]  ;;  %v1225_v56 = vld [vmem:[%s2839_s5 + $0x10] sm:$0xff] }
 0x1a6   : > { %1653 = vmatprep.subr.bf16.mxu1 %v1652_v58  ;;  %v1988_v58 = vmov 0  }
 0x1a7   : > { %1655 = vmatpush1.bf16.msra.mxu1 %v1654_v57  ;;  %1793 = vset.pattern.permute.xlu0 %v1988_v58 }
 0x1a8   : > { %1794 = vset.pattern.permute.xlu1 %v1988_v58  ;;  %1241 = vperm.xlu0 %1793, %v1223_v55  }
 0x1a9   : > { %1251 = vperm.xlu1 %1794, %v1225_v56  }
 0x1aa   : > { %658 = vmatmul.mubr.f32.vlgmr.msra.gmra.mrb[0].mxu1 %v575_v59 }
 0x1ab   : > { %663 = vmatprep.mubr.f32.mxu1 %v1987_v7 }
 0x1ae   : > { %664 = vmatmul.mubr.f32.gmra.mrb[2].mxu1 %v576_v8 }
 0x1af   : > { %669 = vmatprep.mubr.f32.mxu1 %v1987_v7 }
 0x1b2   : > { %670 = vmatmul.mubr.f32.gmra.mrb[4].mxu1 %v577_v60 }
 0x1b3   : > { %675 = vmatprep.mubr.f32.mxu1 %v1987_v7 }
 0x1b6   : > { %676 = vmatmul.mubr.f32.gmra.mrb[6].mxu1 %v578_v61 }
 0x1b7   : > { %681 = vmatprep.mubr.f32.mxu1 %v1987_v7 }
 0x1ba   : > { %682 = vmatmul.mubr.f32.gmra.mrb[8].mxu1 %v579_v62 }
 0x1bb   : > { %687 = vmatprep.mubr.f32.mxu1 %v1987_v7 }
 0x1be   : > { %688 = vmatmul.mubr.f32.gmra.mrb[10].mxu1 %v580_v63 }
 0x1bf   : > { %693 = vmatprep.mubr.f32.mxu1 %v1987_v7 }
 0x1c2   : > { %694 = vmatmul.mubr.f32.gmra.mrb[12].mxu1 %v581_v3  ;;  %v1224_v3 = vld [vmem:[%s2839_s5 + $0x8] sm:$0xff] }
 0x1c3   : > { %699 = vmatprep.mubr.f32.mxu1 %v1987_v7  ;;  %1246 = vperm.xlu0 %1793, %v1224_v3  }
 0x1c6   : > { %700 = vmatmul.mubr.f32.gmra.mrb[14].mxu1 %v582_v9  ;;  %v1226_v9 = vld [vmem:[%s2839_s5 + $0x18] sm:$0xff] }
 0x1c7   : > { %705 = vmatprep.mubr.f32.mxu1 %v1987_v7  ;;  %1256 = vperm.xlu1 %1794, %v1226_v9  }
 0x1ca   : > { %706 = vmatmul.mubr.f32.gmra.mrb[16].mxu1 %v583_v14 }
 0x1cb   : > { %711 = vmatprep.mubr.f32.mxu1 %v1987_v7 }
 0x1ce   : > { %712 = vmatmul.mubr.f32.gmra.mrb[18].mxu1 %v584_v15 }
 0x1cf   : > { %717 = vmatprep.mubr.f32.mxu1 %v1987_v7 }
 0x1d2   : > { %718 = vmatmul.mubr.f32.gmra.mrb[20].mxu1 %v585_v20 }
 0x1d3   : > { %723 = vmatprep.mubr.f32.mxu1 %v1987_v7 }
 0x1d6   : > { %724 = vmatmul.mubr.f32.gmra.mrb[22].mxu1 %v586_v21 }
 0x1d7   : > { %729 = vmatprep.mubr.f32.mxu1 %v1987_v7 }
 0x1da   : > { %730 = vmatmul.mubr.f32.gmra.mrb[24].mxu1 %v587_v26 }
 0x1db   : > { %735 = vmatprep.mubr.f32.mxu1 %v1987_v7 }
 0x1de   : > { %736 = vmatmul.mubr.f32.gmra.mrb[26].mxu1 %v588_v27 }
 0x1df   : > { %741 = vmatprep.mubr.f32.mxu1 %v1987_v7 }
 0x1e2   : > { %742 = vmatmul.mubr.f32.gmra.mrb[28].mxu1 %v589_v32 }
 0x1e3   : > { %747 = vmatprep.mubr.f32.mxu1 %v1987_v7 }
 0x1e6   : > { %748 = vmatmul.mubr.f32.gmra.mrb[30].mxu1 %v590_v33  ;;  %v1227_v33 = vld [vmem:[%s2839_s5 + $0x20] sm:$0xff] }
 0x1e7   : > { %1261 = vperm.xlu0 %1793, %v1227_v33  }
 0x27d   : > { %v659_v39 = vpop.f32.mrb[0].mxu1 }
 0x27e   : > { %v660_v44 = vadd.f32 %v659_v39, %v2430_v38  ;;  %v661_v45 = vpop.f32.mrb[1].mxu1 }
 0x27f   : > { %v662_v48 = vadd.f32 %v661_v45, %v2430_v38 }
 0x280   : > { %v754_v50 = vmax.f32 %v660_v44, 0.0 }
 0x281   : > { %v665_v49 = vpop.f32.mrb[2].mxu1  ;;  %v755_v53 = vmax.f32 %v662_v48, 0.0 }
 0x282   : > { %v666_v51 = vadd.f32 %v665_v49, %v2430_v38  ;;  %v667_v52 = vpop.f32.mrb[3].mxu1  ;;  %v786_v60 = vadd.f32 %v754_v50, %v2210_v2 }
 0x283   : > { %v668_v54 = vadd.f32 %v667_v52, %v2430_v38  ;;  %v787_v14 = vadd.f32 %v755_v53, %v2204_v0  ;;  %v1228_v0 = vld [vmem:[%s2839_s5 + $0x28] sm:$0xff]  ;;  %v1229_v53 = vld [vmem:[%s2839_s5 + $0x30] sm:$0xff] }
 0x284   : > { %v756_v57 = vmax.f32 %v666_v51, 0.0  ;;  %1266 = vperm.xlu1 %1794, %v1228_v0   ;;  %1271 = vperm.xlu0 %1793, %v1229_v53  }
 0x285   : > { %v757_v59 = vmax.f32 %v668_v54, 0.0  ;;  %v671_v8 = vpop.f32.mrb[4].mxu1  ;;  %v1230_v54 = vld [vmem:[%s2839_s5 + $0x38] sm:$0xff] }
 0x286   : > { %v788_v61 = vadd.f32 %v756_v57, %v2215_v4  ;;  %v672_v62 = vadd.f32 %v671_v8, %v2430_v38  ;;  %v673_v63 = vpop.f32.mrb[5].mxu1 }
 0x287   : > { %v789_v15 = vadd.f32 %v757_v59, %v2207_v1  ;;  %v674_v20 = vadd.f32 %v673_v63, %v2430_v38 }
 0x288   : > { %v1658_v2 = vpack.c.bf16 %v788_v61, %v786_v60  ;;  %v758_v26 = vmax.f32 %v672_v62, 0.0  ;;  %1276 = vperm.xlu1 %1794, %v1230_v54   ;;  %v1231_v61 = vld [vmem:[%s2839_s5 + $0x40] sm:$0xff] }
 0x289   : > { %v677_v21 = vpop.f32.mrb[6].mxu1  ;;  %v1656_v4 = vpack.c.bf16 %v789_v15, %v787_v14  ;;  %v759_v1 = vmax.f32 %v674_v20, 0.0  ;;  %1281 = vperm.xlu0 %1793, %v1231_v61  }
 0x28a   : > { %v678_v27 = vadd.f32 %v677_v21, %v2430_v38  ;;  %v679_v32 = vpop.f32.mrb[7].mxu1  ;;  %v790_v49 = vadd.f32 %v758_v26, %v2230_v10  ;;  %v1233_v21 = vld [vmem:[%s2839_s5 + $0x50] sm:$0xff] }
 0x28b   : > { %v680_v39 = vadd.f32 %v679_v32, %v2430_v38  ;;  %1657 = vmatprep.subr.bf16.mxu0 %v1656_v4  ;;  %v791_v55 = vadd.f32 %v759_v1, %v2218_v5  ;;  %v1232_v5 = vld [vmem:[%s2839_s5 + $0x48] sm:$0xff]  ;;  %v1234_v4 = vld [vmem:[%s2839_s5 + $0x58] sm:$0xff] }
 0x28c   : > { %v760_v44 = vmax.f32 %v678_v27, 0.0  ;;  %1659 = vmatpush1.bf16.msra.mxu0 %v1658_v2  ;;  %1286 = vperm.xlu1 %1794, %v1232_v5  }
 0x28d   : > { %v761_v45 = vmax.f32 %v680_v39, 0.0  ;;  %v683_v48 = vpop.f32.mrb[8].mxu1  ;;  %1291 = vperm.xlu0 %1793, %v1233_v21  }
 0x28e   : > { %v792_v50 = vadd.f32 %v760_v44, %v2233_v11  ;;  %v684_v51 = vadd.f32 %v683_v48, %v2430_v38  ;;  %v685_v52 = vpop.f32.mrb[9].mxu1  ;;  %v1235_v44 = vld [vmem:[%s2839_s5 + $0x60] sm:$0xff] }
 0x28f   : > { %v793_v56 = vadd.f32 %v761_v45, %v2221_v6  ;;  %v686_v57 = vadd.f32 %v685_v52, %v2430_v38 }
 0x290   : > { %v1662_v10 = vpack.c.bf16 %v792_v50, %v790_v49  ;;  %v762_v59 = vmax.f32 %v684_v51, 0.0  ;;  %1296 = vperm.xlu1 %1794, %v1234_v4  }
 0x291   : > { %v689_v58 = vpop.f32.mrb[10].mxu1  ;;  %v1660_v11 = vpack.c.bf16 %v793_v56, %v791_v55  ;;  %v763_v6 = vmax.f32 %v686_v57, 0.0  ;;  %1301 = vperm.xlu0 %1793, %v1235_v44   ;;  %v1237_v55 = vld [vmem:[%s2839_s5 + $0x70] sm:$0xff]  ;;  %v1238_v56 = vld [vmem:[%s2839_s5 + $0x78] sm:$0xff] }
 0x292   : > { %v690_v8 = vadd.f32 %v689_v58, %v2430_v38  ;;  %v691_v60 = vpop.f32.mrb[11].mxu1  ;;  %v794_v14 = vadd.f32 %v762_v59, %v2246_v16 }
 0x293   : > { %v692_v62 = vadd.f32 %v691_v60, %v2430_v38  ;;  %1661 = vmatprep.subr.bf16.mxu0 %v1660_v11  ;;  %v795_v26 = vadd.f32 %v763_v6, %v2236_v12  ;;  %v1236_v12 = vld [vmem:[%s2839_s5 + $0x68] sm:$0xff] }
 0x294   : > { %v764_v63 = vmax.f32 %v690_v8, 0.0  ;;  %1663 = vmatpush1.bf16.msra.mxu0 %v1662_v10  ;;  %1306 = vperm.xlu1 %1794, %v1236_v12  }
 0x295   : > { %v765_v3 = vmax.f32 %v692_v62, 0.0  ;;  %v695_v9 = vpop.f32.mrb[12].mxu1  ;;  %1311 = vperm.xlu0 %1793, %v1237_v55  }
 0x296   : > { %v796_v15 = vadd.f32 %v764_v63, %v2249_v17  ;;  %v696_v20 = vadd.f32 %v695_v9, %v2430_v38  ;;  %v697_v2 = vpop.f32.mrb[13].mxu1 }
 0x297   : > { %v797_v27 = vadd.f32 %v765_v3, %v2239_v13  ;;  %v698_v32 = vadd.f32 %v697_v2, %v2430_v38 }
 0x298   : > { %v1666_v16 = vpack.c.bf16 %v796_v15, %v794_v14  ;;  %v766_v0 = vmax.f32 %v696_v20, 0.0  ;;  %1316 = vperm.xlu1 %1794, %v1238_v56  }
 0x299   : > { %v701_v33 = vpop.f32.mrb[14].mxu1  ;;  %v1664_v17 = vpack.c.bf16 %v797_v27, %v795_v26  ;;  %v767_v13 = vmax.f32 %v698_v32, 0.0 }
 0x29a   : > { %v702_v1 = vadd.f32 %v701_v33, %v2430_v38  ;;  %v703_v39 = vpop.f32.mrb[15].mxu1  ;;  %v798_v51 = vadd.f32 %v766_v0, %v2262_v22 }
 0x29b   : > { %v704_v45 = vadd.f32 %v703_v39, %v2430_v38  ;;  %1665 = vmatprep.subr.bf16.mxu0 %v1664_v17  ;;  %v799_v57 = vadd.f32 %v767_v13, %v2252_v18 }
 0x29c   : > { %v768_v48 = vmax.f32 %v702_v1, 0.0  ;;  %1667 = vmatpush1.bf16.msra.mxu0 %v1666_v16 }
 0x29d   : > { %v769_v49 = vmax.f32 %v704_v45, 0.0  ;;  %v707_v50 = vpop.f32.mrb[16].mxu1 }
 0x29e   : > { %v800_v52 = vadd.f32 %v768_v48, %v2265_v23  ;;  %v708_v53 = vadd.f32 %v707_v50, %v2430_v38  ;;  %v709_v54 = vpop.f32.mrb[17].mxu1 }
 0x29f   : > { %v801_v10 = vadd.f32 %v769_v49, %v2255_v19  ;;  %v710_v58 = vadd.f32 %v709_v54, %v2430_v38 }
 0x2a0   : > { %v1670_v22 = vpack.c.bf16 %v800_v52, %v798_v51  ;;  %v770_v59 = vmax.f32 %v708_v53, 0.0 }
 0x2a1   : > { %v713_v11 = vpop.f32.mrb[18].mxu1  ;;  %v1668_v23 = vpack.c.bf16 %v801_v10, %v799_v57  ;;  %v771_v61 = vmax.f32 %v710_v58, 0.0 }
 0x2a2   : > { %v714_v8 = vadd.f32 %v713_v11, %v2430_v38  ;;  %v715_v60 = vpop.f32.mrb[19].mxu1  ;;  %v802_v19 = vadd.f32 %v770_v59, %v2278_v28 }
 0x2a3   : > { %v716_v5 = vadd.f32 %v715_v60, %v2430_v38  ;;  %1669 = vmatprep.subr.bf16.mxu0 %v1668_v23  ;;  %v803_v14 = vadd.f32 %v771_v61, %v2268_v24 }
 0x2a4   : > { %v772_v6 = vmax.f32 %v714_v8, 0.0  ;;  %1671 = vmatpush1.bf16.msra.mxu0 %v1670_v22 }
 0x2a5   : > { %v773_v18 = vmax.f32 %v716_v5, 0.0  ;;  %v719_v62 = vpop.f32.mrb[20].mxu1 }
 0x2a6   : > { %v804_v63 = vadd.f32 %v772_v6, %v2281_v29  ;;  %v720_v3 = vadd.f32 %v719_v62, %v2430_v38  ;;  %v721_v9 = vpop.f32.mrb[21].mxu1 }
 0x2a7   : > { %v805_v15 = vadd.f32 %v773_v18, %v2271_v25  ;;  %v722_v20 = vadd.f32 %v721_v9, %v2430_v38  ;;  %v826_v9 = vld [vmem:[#allocation7 + $0x138] sm:$0xff] }
 0x2a8   : > { %v1674_v2 = vpack.c.bf16 %v804_v63, %v802_v19  ;;  %v774_v26 = vmax.f32 %v720_v3, 0.0  ;;  %v819_v63 = vld [vmem:[#allocation7 + $0x100] sm:$0xff]  ;;  %v821_v3 = vld [vmem:[#allocation7 + $0x110] sm:$0xff] }
 0x2a9   : > { %v725_v21 = vpop.f32.mrb[22].mxu1  ;;  %v1672_v4 = vpack.c.bf16 %v805_v15, %v803_v14  ;;  %v775_v16 = vmax.f32 %v722_v20, 0.0  ;;  %v827_v14 = vld [vmem:[#allocation7 + $0x140] sm:$0xff]  ;;  %v828_v15 = vld [vmem:[#allocation7 + $0x148] sm:$0xff]  ;;  %v829_v20 = vld [vmem:[#allocation7 + $0x150] sm:$0xff] }
 0x2aa   : > { %v726_v27 = vadd.f32 %v725_v21, %v2430_v38  ;;  %v727_v32 = vpop.f32.mrb[23].mxu1  ;;  %v806_v24 = vadd.f32 %v774_v26, %v2294_v34  ;;  %v831_v21 = vld [vmem:[#allocation7 + $0x160] sm:$0xff]  ;;  %v833_v26 = vld [vmem:[#allocation7 + $0x170] sm:$0xff] }
 0x2ab   : > { %v728_v28 = vadd.f32 %v727_v32, %v2430_v38  ;;  %1673 = vmatprep.subr.bf16.mxu0 %v1672_v4  ;;  %v807_v39 = vadd.f32 %v775_v16, %v2284_v30  ;;  %v832_v4 = vld [vmem:[#allocation7 + $0x168] sm:$0xff]  ;;  %v1030_v32 = vld [vmem:[%s2838_s4] sm:$0xff]  ;;  %v2562_v16 = vstv %s1498_s20  ;;  %s1395_s20 = sshll.u32 %s298_s19, 4  ;;  %s2792_s20 = int_to_ptr.vmem [resolvable:$true] %s1395_s20 }
 0x2ac   : > { %v776_v29 = vmax.f32 %v726_v27, 0.0  ;;  %1675 = vmatpush1.bf16.msra.mxu0 %v1674_v2  ;;  %v830_v2 = vld [vmem:[#allocation7 + $0x158] sm:$0xff]  ;;  %1568 = vmatprep.mubr.f32.mxu1 %v1030_v32  ;;  %s1904_s30 = scalar_lea.vmem %s2792_s20, 16  ;;  %p1911_p6 = scmp.lt.s32.totalorder %s2792_s20, %s1909_s8 }
 0x2ad   : > { %v777_v33 = vmax.f32 %v728_v28, 0.0  ;;  %v731_v17 = vpop.f32.mrb[24].mxu1  ;;  %v834_v27 = vld [vmem:[#allocation7 + $0x178] sm:$0xff]  ;;  %p1905_p3 = scmp.ne.s32.totalorder %s2792_s20, %s1904_s30 }
 0x2ae   : > { %v808_v25 = vadd.f32 %v776_v29, %v2297_v35  ;;  %v732_v0 = vadd.f32 %v731_v17, %v2430_v38  ;;  %v733_v1 = vpop.f32.mrb[25].mxu1 }
 0x2af   : > { %v809_v44 = vadd.f32 %v777_v33, %v2287_v31  ;;  %v734_v12 = vadd.f32 %v733_v1, %v2430_v38  ;;  %p1906_p5 = pnand %p1905_p3, %p2859_p1 }
 0x2b0   : > { %v1678_v13 = vpack.c.bf16 %v808_v25, %v806_v24  ;;  %v778_v49 = vmax.f32 %v732_v0, 0.0  ;;  %v1799_v24 = vld [vmem:[%s2197_s17] sm:$0xff]  ;;  %v1800_v25 = vld [vmem:[%s2197_s17 + $0x8] sm:$0xff] }
 0x2b1   : > { %v737_v45 = vpop.f32.mrb[26].mxu1  ;;  %v1676_v48 = vpack.c.bf16 %v809_v44, %v807_v39  ;;  %v779_v52 = vmax.f32 %v734_v12, 0.0  ;;  %p1907_p4 = pneg %p1906_p5 }
 0x2b2   : > { %v738_v50 = vadd.f32 %v737_v45, %v2430_v38  ;;  %v739_v51 = vpop.f32.mrb[27].mxu1  ;;  %v810_v30 = vadd.f32 %v778_v49, %v2310_v40  ;;  %v1801_v45 = vld [vmem:[%s2197_s17 + $0x10] sm:$0xff]  ;;  %v1802_v49 = vld [vmem:[%s2197_s17 + $0x18] sm:$0xff] }
 0x2b3   : > { %v740_v34 = vadd.f32 %v739_v51, %v2430_v38  ;;  %1677 = vmatprep.subr.bf16.mxu0 %v1676_v48  ;;  %v811_v57 = vadd.f32 %v779_v52, %v2300_v36 }
 0x2b4   : > { %v780_v35 = vmax.f32 %v738_v50, 0.0  ;;  %1679 = vmatpush1.bf16.msra.mxu0 %v1678_v13 }
 0x2b5   : > { %v781_v53 = vmax.f32 %v740_v34, 0.0  ;;  %v743_v54 = vpop.f32.mrb[28].mxu1 }
 0x2b6   : > { %v812_v31 = vadd.f32 %v780_v35, %v2313_v41  ;;  %v744_v55 = vadd.f32 %v743_v54, %v2430_v38  ;;  %v745_v56 = vpop.f32.mrb[29].mxu1 }
 0x2b7   : > { %v813_v10 = vadd.f32 %v781_v53, %v2303_v37  ;;  %v746_v58 = vadd.f32 %v745_v56, %v2430_v38 }
 0x2b8   : > { %v1682_v22 = vpack.c.bf16 %v812_v31, %v810_v30  ;;  %v782_v59 = vmax.f32 %v744_v55, 0.0  ;;  %v1803_v30 = vld [vmem:[%s2197_s17 + $0x20] sm:$0xff]  ;;  %v1804_v55 = vld [vmem:[%s2197_s17 + $0x28] sm:$0xff] }
 0x2b9   : > { %v749_v11 = vpop.f32.mrb[30].mxu1  ;;  %v1680_v23 = vpack.c.bf16 %v813_v10, %v811_v57  ;;  %v783_v61 = vmax.f32 %v746_v58, 0.0 }
 0x2ba   : > { %v750_v8 = vadd.f32 %v749_v11, %v2430_v38  ;;  %v751_v60 = vpop.f32.mrb[31].mxu1  ;;  %v814_v36 = vadd.f32 %v782_v59, %v2326_v46  ;;  %v822_v46 = vld [vmem:[#allocation7 + $0x118] sm:$0xff] }
 0x2bb   : > { %v752_v40 = vadd.f32 %v751_v60, %v2430_v38  ;;  %1681 = vmatprep.subr.bf16.mxu0 %v1680_v23  ;;  %v815_v6 = vadd.f32 %v783_v61, %v2316_v42  ;;  %v820_v38 = vld [vmem:[#allocation7 + $0x108] sm:$0xff]  ;;  %v823_v42 = vld [vmem:[#allocation7 + $0x120] sm:$0xff]  ;;  %v1805_v23 = vld [vmem:[%s2197_s17 + $0x30] sm:$0xff] }
 0x2bc   : > { %v784_v41 = vmax.f32 %v750_v8, 0.0  ;;  %1683 = vmatpush1.bf16.msra.mxu0 %v1682_v22  ;;  %v1806_v8 = vld [vmem:[%s2197_s17 + $0x38] sm:$0xff] }
 0x2bd   : > { %v785_v5 = vmax.f32 %v752_v40, 0.0 }
 0x2be   : > { %v816_v37 = vadd.f32 %v784_v41, %v2329_v47  ;;  %v825_v47 = vld [vmem:[#allocation7 + $0x130] sm:$0xff] }
 0x2bf   : > { %v817_v18 = vadd.f32 %v785_v5, %v2319_v43  ;;  %v824_v43 = vld [vmem:[#allocation7 + $0x128] sm:$0xff] }
 0x2c0   : > { %v1686_v62 = vpack.c.bf16 %v816_v37, %v814_v36 }
 0x2c1   : > { %v1684_v19 = vpack.c.bf16 %v817_v18, %v815_v6  ;;  %v1807_v6 = vld [vmem:[%s2197_s17 + $0x40] sm:$0xff] }
 0x2c3   : > { %1685 = vmatprep.subr.bf16.mxu0 %v1684_v19 }
 0x2c4   : > { %1687 = vmatpush1.bf16.msra.mxu0 %v1686_v62  ;;  %v1808_v62 = vld [vmem:[%s2197_s17 + $0x48] sm:$0xff] }
 0x2c7   : > { %902 = vmatmul.mubr.f32.vlgmr.msra.gmra.mrb[32].mxu0 %v819_v63 }
 0x2c8   : > { %907 = vmatprep.mubr.f32.mxu0 %v1987_v7 }
 0x2cb   : > { %908 = vmatmul.mubr.f32.gmra.mrb[34].mxu0 %v820_v38 }
 0x2cc   : > { %913 = vmatprep.mubr.f32.mxu0 %v1987_v7 }
 0x2cf   : > { %914 = vmatmul.mubr.f32.gmra.mrb[36].mxu0 %v821_v3 }
 0x2d0   : > { %919 = vmatprep.mubr.f32.mxu0 %v1987_v7 }
 0x2d3   : > { %920 = vmatmul.mubr.f32.gmra.mrb[38].mxu0 %v822_v46 }
 0x2d4   : > { %925 = vmatprep.mubr.f32.mxu0 %v1987_v7 }
 0x2d7   : > { %926 = vmatmul.mubr.f32.gmra.mrb[40].mxu0 %v823_v42 }
 0x2d8   : > { %931 = vmatprep.mubr.f32.mxu0 %v1987_v7 }
 0x2db   : > { %932 = vmatmul.mubr.f32.gmra.mrb[42].mxu0 %v824_v43  ;;  %v1809_v43 = vld [vmem:[%s2197_s17 + $0x50] sm:$0xff] }
 0x2dc   : > { %937 = vmatprep.mubr.f32.mxu0 %v1987_v7 }
 0x2df   : > { %938 = vmatmul.mubr.f32.gmra.mrb[44].mxu0 %v825_v47 }
 0x2e0   : > { %943 = vmatprep.mubr.f32.mxu0 %v1987_v7 }
 0x2e3   : > { %944 = vmatmul.mubr.f32.gmra.mrb[46].mxu0 %v826_v9  ;;  %v1810_v9 = vld [vmem:[%s2197_s17 + $0x58] sm:$0xff] }
 0x2e4   : > { %949 = vmatprep.mubr.f32.mxu0 %v1987_v7 }
 0x2e7   : > { %950 = vmatmul.mubr.f32.gmra.mrb[48].mxu0 %v827_v14 }
 0x2e8   : > { %955 = vmatprep.mubr.f32.mxu0 %v1987_v7 }
 0x2eb   : > { %956 = vmatmul.mubr.f32.gmra.mrb[50].mxu0 %v828_v15 }
 0x2ec   : > { %961 = vmatprep.mubr.f32.mxu0 %v1987_v7 }
 0x2ef   : > { %962 = vmatmul.mubr.f32.gmra.mrb[52].mxu0 %v829_v20 }
 0x2f0   : > { %967 = vmatprep.mubr.f32.mxu0 %v1987_v7 }
 0x2f3   : > { %968 = vmatmul.mubr.f32.gmra.mrb[54].mxu0 %v830_v2 }
 0x2f4   : > { %973 = vmatprep.mubr.f32.mxu0 %v1987_v7 }
 0x2f7   : > { %974 = vmatmul.mubr.f32.gmra.mrb[56].mxu0 %v831_v21 }
 0x2f8   : > { %979 = vmatprep.mubr.f32.mxu0 %v1987_v7 }
 0x2fb   : > { %980 = vmatmul.mubr.f32.gmra.mrb[58].mxu0 %v832_v4 }
 0x2fc   : > { %985 = vmatprep.mubr.f32.mxu0 %v1987_v7 }
 0x2ff   : > { %986 = vmatmul.mubr.f32.gmra.mrb[60].mxu0 %v833_v26 }
 0x300   : > { %991 = vmatprep.mubr.f32.mxu0 %v1987_v7 }
 0x303   : > { %992 = vmatmul.mubr.f32.gmra.mrb[62].mxu0 %v834_v27  ;;  %v1811_v27 = vld [vmem:[%s2197_s17 + $0x60] sm:$0xff] }
 0x39a   : > { %v903_v28 = vpop.f32.mrb[32].mxu0 }
 0x39b   : > { %v904_v29 = vadd.f32 %v903_v28, %v2562_v16  ;;  %v905_v33 = vpop.f32.mrb[33].mxu0  ;;  %v1812_v28 = vld [vmem:[%s2197_s17 + $0x68] sm:$0xff] }
 0x39c   : > { %v906_v17 = vadd.f32 %v905_v33, %v2562_v16 }
 0x39d   : > { %v2567_v7 = vadd.f32 %v1799_v24, %v904_v29 }
 0x39e   : > { %v999_v0 = vadd.f32 %v1800_v25, %v906_v17  ;;  %v909_v1 = vpop.f32.mrb[34].mxu0 }
 0x39f   : > { %v910_v39 = vadd.f32 %v909_v1, %v2562_v16  ;;  %v911_v44 = vpop.f32.mrb[35].mxu0  ;;  %v1813_v1 = vld [vmem:[%s2197_s17 + $0x70] sm:$0xff] }
 0x3a0   : > { %v912_v12 = vadd.f32 %v911_v44, %v2562_v16  ;;  %v2573_v13 = vadd.f32 %v999_v0, %v2567_v7  ;;  %v1814_v44 = vld [vmem:[%s2197_s17 + $0x78] sm:$0xff] }
 0x3a1   : > { %v2576_v48 = vadd.f32 %v1801_v45, %v910_v39 }
 0x3a2   : > { %v1001_v50 = vadd.f32 %v1802_v49, %v912_v12  ;;  %v915_v51 = vpop.f32.mrb[36].mxu0 }
 0x3a3   : > { %v916_v52 = vadd.f32 %v915_v51, %v2562_v16  ;;  %v917_v34 = vpop.f32.mrb[37].mxu0 }
 0x3a4   : > { %v918_v35 = vadd.f32 %v917_v34, %v2562_v16  ;;  %v2582_v53 = vadd.f32 %v1001_v50, %v2576_v48  ;;  %v1688_v54 = vpack.c.bf16 %v1001_v50, %v999_v0 }
 0x3a5   : > { %v2585_v31 = vadd.f32 %v1803_v30, %v916_v52  ;;  %v1816_v30 = vld [vmem:[%s2197_s17 + $0x88] sm:$0xff] }
 0x3a6   : > { %v1003_v56 = vadd.f32 %v1804_v55, %v918_v35  ;;  %v921_v57 = vpop.f32.mrb[38].mxu0  ;;  %1689 = vmatprep.subr.bf16.mxu1 %v1688_v54  ;;  %v1815_v35 = vld [vmem:[%s2197_s17 + $0x80] sm:$0xff] }
 0x3a7   : > { %v922_v10 = vadd.f32 %v921_v57, %v2562_v16  ;;  %v923_v58 = vpop.f32.mrb[39].mxu0  ;;  %1691 = vmatpush3.bf16.msra.mxu1 %v1688_v54 }
 0x3a8   : > { %v924_v22 = vadd.f32 %v923_v58, %v2562_v16  ;;  %v2591_v11 = vadd.f32 %v1003_v56, %v2585_v31 }
 0x3a9   : > { %v2594_v59 = vadd.f32 %v1805_v23, %v922_v10  ;;  %v1817_v23 = vld [vmem:[%s2197_s17 + $0x90] sm:$0xff] }
 0x3aa   : > { %v1005_v60 = vadd.f32 %v1806_v8, %v924_v22  ;;  %v927_v61 = vpop.f32.mrb[40].mxu0 }
 0x3ab   : > { %v928_v40 = vadd.f32 %v927_v61, %v2562_v16  ;;  %v929_v41 = vpop.f32.mrb[41].mxu0 }
 0x3ac   : > { %v930_v5 = vadd.f32 %v929_v41, %v2562_v16  ;;  %v2600_v36 = vadd.f32 %v1005_v60, %v2594_v59  ;;  %v1692_v37 = vpack.c.bf16 %v1005_v60, %v1003_v56  ;;  %v1818_v60 = vld [vmem:[%s2197_s17 + $0x98] sm:$0xff] }
 0x3ad   : > { %v2603_v18 = vadd.f32 %v1807_v6, %v928_v40 }
 0x3ae   : > { %v1007_v19 = vadd.f32 %v1808_v62, %v930_v5  ;;  %v933_v63 = vpop.f32.mrb[42].mxu0  ;;  %1693 = vmatprep.subr.bf16.mxu1 %v1692_v37 }
 0x3af   : > { %v934_v38 = vadd.f32 %v933_v63, %v2562_v16  ;;  %v935_v3 = vpop.f32.mrb[43].mxu0  ;;  %1695 = vmatpush3.bf16.msra.mxu1 %v1692_v37 }
 0x3b0   : > { %v936_v46 = vadd.f32 %v935_v3, %v2562_v16  ;;  %v2609_v42 = vadd.f32 %v1007_v19, %v2603_v18 }
 0x3b1   : > { %v2612_v47 = vadd.f32 %v1809_v43, %v934_v38  ;;  %v1820_v38 = vld [vmem:[%s2197_s17 + $0xa8] sm:$0xff] }
 0x3b2   : > { %v1009_v14 = vadd.f32 %v1810_v9, %v936_v46  ;;  %v939_v15 = vpop.f32.mrb[44].mxu0 }
 0x3b3   : > { %v940_v20 = vadd.f32 %v939_v15, %v2562_v16  ;;  %v941_v2 = vpop.f32.mrb[45].mxu0 }
 0x3b4   : > { %v942_v21 = vadd.f32 %v941_v2, %v2562_v16  ;;  %v2618_v4 = vadd.f32 %v1009_v14, %v2612_v47  ;;  %v1696_v26 = vpack.c.bf16 %v1009_v14, %v1007_v19  ;;  %v1819_v19 = vld [vmem:[%s2197_s17 + $0xa0] sm:$0xff] }
 0x3b5   : > { %v2621_v32 = vadd.f32 %v1811_v27, %v940_v20  ;;  %v1821_v20 = vld [vmem:[%s2197_s17 + $0xb0] sm:$0xff] }
 0x3b6   : > { %v1011_v29 = vadd.f32 %v1812_v28, %v942_v21  ;;  %v945_v33 = vpop.f32.mrb[46].mxu0  ;;  %1697 = vmatprep.subr.bf16.mxu1 %v1696_v26  ;;  %v1822_v21 = vld [vmem:[%s2197_s17 + $0xb8] sm:$0xff] }
 0x3b7   : > { %v946_v17 = vadd.f32 %v945_v33, %v2562_v16  ;;  %v947_v24 = vpop.f32.mrb[47].mxu0  ;;  %1699 = vmatpush3.bf16.msra.mxu1 %v1696_v26 }
 0x3b8   : > { %v948_v25 = vadd.f32 %v947_v24, %v2562_v16  ;;  %v2627_v0 = vadd.f32 %v1011_v29, %v2621_v32 }
 0x3b9   : > { %v2630_v39 = vadd.f32 %v1813_v1, %v946_v17 }
 0x3ba   : > { %v1013_v12 = vadd.f32 %v1814_v44, %v948_v25  ;;  %v951_v45 = vpop.f32.mrb[48].mxu0  ;;  %v1823_v25 = vld [vmem:[%s2197_s17 + $0xc0] sm:$0xff]  ;;  %v1824_v44 = vld [vmem:[%s2197_s17 + $0xc8] sm:$0xff] }
 0x3bb   : > { %v952_v49 = vadd.f32 %v951_v45, %v2562_v16  ;;  %v953_v50 = vpop.f32.mrb[49].mxu0 }
 0x3bc   : > { %v954_v51 = vadd.f32 %v953_v50, %v2562_v16  ;;  %v2636_v52 = vadd.f32 %v1013_v12, %v2630_v39  ;;  %v1700_v34 = vpack.c.bf16 %v1013_v12, %v1011_v29 }
 0x3bd   : > { %v2639_v54 = vadd.f32 %v1815_v35, %v952_v49  ;;  %v1825_v35 = vld [vmem:[%s2197_s17 + $0xd0] sm:$0xff] }
 0x3be   : > { %v1015_v55 = vadd.f32 %v1816_v30, %v954_v51  ;;  %v957_v56 = vpop.f32.mrb[50].mxu0  ;;  %1701 = vmatprep.subr.bf16.mxu1 %v1700_v34 }
 0x3bf   : > { %v958_v57 = vadd.f32 %v957_v56, %v2562_v16  ;;  %v959_v10 = vpop.f32.mrb[51].mxu0  ;;  %1703 = vmatpush3.bf16.msra.mxu1 %v1700_v34 }
 0x3c0   : > { %v960_v58 = vadd.f32 %v959_v10, %v2562_v16  ;;  %v2645_v22 = vadd.f32 %v1015_v55, %v2639_v54 }
 0x3c1   : > { %v2648_v8 = vadd.f32 %v1817_v23, %v958_v57 }
 0x3c2   : > { %v1017_v61 = vadd.f32 %v1818_v60, %v960_v58  ;;  %v963_v40 = vpop.f32.mrb[52].mxu0 }
 0x3c3   : > { %v964_v41 = vadd.f32 %v963_v40, %v2562_v16  ;;  %v965_v5 = vpop.f32.mrb[53].mxu0  ;;  %v1827_v40 = vld [vmem:[%s2197_s17 + $0xe0] sm:$0xff] }
 0x3c4   : > { %v966_v37 = vadd.f32 %v965_v5, %v2562_v16  ;;  %v2654_v6 = vadd.f32 %v1017_v61, %v2648_v8  ;;  %v1704_v62 = vpack.c.bf16 %v1017_v61, %v1015_v55  ;;  %v1826_v55 = vld [vmem:[%s2197_s17 + $0xd8] sm:$0xff]  ;;  %v1828_v5 = vld [vmem:[%s2197_s17 + $0xe8] sm:$0xff] }
 0x3c5   : > { %v2657_v63 = vadd.f32 %v1819_v19, %v964_v41 }
 0x3c6   : > { %v1019_v3 = vadd.f32 %v1820_v38, %v966_v37  ;;  %v969_v46 = vpop.f32.mrb[54].mxu0  ;;  %1705 = vmatprep.subr.bf16.mxu1 %v1704_v62 }
 0x3c7   : > { %v970_v43 = vadd.f32 %v969_v46, %v2562_v16  ;;  %v971_v9 = vpop.f32.mrb[55].mxu0  ;;  %1707 = vmatpush3.bf16.msra.mxu1 %v1704_v62 }
 0x3c8   : > { %v972_v14 = vadd.f32 %v971_v9, %v2562_v16  ;;  %v2663_v15 = vadd.f32 %v1019_v3, %v2657_v63 }
 0x3c9   : > { %v2666_v2 = vadd.f32 %v1821_v20, %v970_v43  ;;  %v1829_v43 = vld [vmem:[%s2197_s17 + $0xf0] sm:$0xff] }
 0x3ca   : > { %v1021_v26 = vadd.f32 %v1822_v21, %v972_v14  ;;  %v975_v27 = vpop.f32.mrb[56].mxu0  ;;  %v1830_v14 = vld [vmem:[%s2197_s17 + $0xf8] sm:$0xff]  ;;  %s1910_s17 = scalar_lea.vmem %s1909_s8, 32 }
 0x3cb   : > { %v976_v28 = vadd.f32 %v975_v27, %v2562_v16  ;;  %v977_v29 = vpop.f32.mrb[57].mxu0  ;;  %v1031_v27 = vld [vmem:[%s2838_s4 + $0x8] sm:$0xff]  ;;  %p1912_p9 = scmp.lt.s32.totalorder %s1910_s17, %s1904_s30 }
 0x3cc   : > { %v978_v33 = vadd.f32 %v977_v29, %v2562_v16  ;;  %v2672_v17 = vadd.f32 %v1021_v26, %v2666_v2  ;;  %v1708_v24 = vpack.c.bf16 %v1021_v26, %v1019_v3  ;;  %v1034_v29 = vld [vmem:[%s2838_s4 + $0x20] sm:$0xff] }
 0x3cd   : > { %v2675_v1 = vadd.f32 %v1823_v25, %v976_v28  ;;  %v1033_v28 = vld [vmem:[%s2838_s4 + $0x18] sm:$0xff]  ;;  %p1913_p11 = por %p1912_p9, %p1911_p6 }
 0x3ce   : > { %v1023_v12 = vadd.f32 %v1824_v44, %v978_v33  ;;  %v981_v45 = vpop.f32.mrb[58].mxu0  ;;  %1709 = vmatprep.subr.bf16.mxu1 %v1708_v24  ;;  %v1035_v33 = vld [vmem:[%s2838_s4 + $0x28] sm:$0xff]  ;;  %v1037_v25 = vld [vmem:[%s2838_s4 + $0x38] sm:$0xff]  ;;  %v1038_v44 = vld [vmem:[%s2838_s4 + $0x40] sm:$0xff] }
 0x3cf   : > { %v982_v49 = vadd.f32 %v981_v45, %v2562_v16  ;;  %v983_v50 = vpop.f32.mrb[59].mxu0  ;;  %1711 = vmatpush3.bf16.msra.mxu1 %v1708_v24  ;;  %v1036_v24 = vld [vmem:[%s2838_s4 + $0x30] sm:$0xff]  ;;  %p1914_p0 = pnand %p1913_p11, %p1907_p4 }
 0x3d0   : > { %v984_v51 = vadd.f32 %v983_v50, %v2562_v16  ;;  %v2681_v34 = vadd.f32 %v1023_v12, %v2675_v1  ;;  %v1040_v45 = vld [vmem:[%s2838_s4 + $0x50] sm:$0xff]  ;;  %v1042_v50 = vld [vmem:[%s2838_s4 + $0x60] sm:$0xff] }
 0x3d1   : > { %v2684_v30 = vadd.f32 %v1825_v35, %v982_v49  ;;  %v1041_v49 = vld [vmem:[%s2838_s4 + $0x58] sm:$0xff]  ;;  %v1044_v35 = vld [vmem:[%s2838_s4 + $0x70] sm:$0xff] }
 0x3d2   : > { %v1025_v56 = vadd.f32 %v1826_v55, %v984_v51  ;;  %v987_v57 = vpop.f32.mrb[60].mxu0  ;;  %v1043_v51 = vld [vmem:[%s2838_s4 + $0x68] sm:$0xff]  ;;  %v1045_v55 = vld [vmem:[%s2838_s4 + $0x78] sm:$0xff] }
 0x3d3   : > { %v988_v10 = vadd.f32 %v987_v57, %v2562_v16  ;;  %v989_v58 = vpop.f32.mrb[61].mxu0  ;;  %v1252_v57 = vpop.permute.xlu1 %1251 }
 0x3d4   : > { %v990_v23 = vadd.f32 %v989_v58, %v2562_v16  ;;  %v2690_v60 = vadd.f32 %v1025_v56, %v2684_v30  ;;  %v1712_v61 = vpack.c.bf16 %v1025_v56, %v1023_v12  ;;  %v1039_v12 = vld [vmem:[%s2838_s4 + $0x48] sm:$0xff]  ;;  %v1242_v56 = vpop.permute.xlu0 %1241 }
 0x3d5   : > { %v2693_v41 = vadd.f32 %v1827_v40, %v988_v10 }
 0x3d6   : > { %v1027_v37 = vadd.f32 %v1828_v5, %v990_v23  ;;  %v993_v62 = vpop.f32.mrb[62].mxu0  ;;  %1713 = vmatprep.subr.bf16.mxu1 %v1712_v61  ;;  %v1319_v5 = vmul.f32 %v1242_v56, %v2573_v13 }
 0x3d7   : > { %v994_v19 = vadd.f32 %v993_v62, %v2562_v16  ;;  %v995_v38 = vpop.f32.mrb[63].mxu0  ;;  %1715 = vmatpush3.bf16.msra.mxu1 %v1712_v61 }
 0x3d8   : > { %v996_v3 = vadd.f32 %v995_v38, %v2562_v16  ;;  %v2699_v46 = vadd.f32 %v1027_v37, %v2693_v41  ;;  %v1032_v16 = vld [vmem:[%s2838_s4 + $0x10] sm:$0xff]  ;;  %v1247_v10 = vpop.permute.xlu0 %1246 }
 0x3d9   : > { %v2702_v9 = vadd.f32 %v1829_v43, %v994_v19  ;;  %v1320_v23 = vmul.f32 %v1247_v10, %v2582_v53 }
 0x3da   : > { %v1029_v20 = vadd.f32 %v1830_v14, %v996_v3 }
 0x3dc   : > { %v2706_v21 = vadd.f32 %v1029_v20, %v2702_v9  ;;  %v1716_v26 = vpack.c.bf16 %v1029_v20, %v1027_v37  ;;  %v1257_v37 = vpop.permute.xlu1 %1256 }
 0x3dd   : > { %v1322_v43 = vmul.f32 %v1257_v37, %v2600_v36 }
 0x3de   : > { %1717 = vmatprep.subr.bf16.mxu1 %v1716_v26 }
 0x3df   : > { %1719 = vmatpush3.bf16.msra.mxu1 %v1716_v26  ;;  %v1321_v26 = vmul.f32 %v1252_v57, %v2591_v11 }
 0x3e2   : > { %1569 = vmatmul.mubr.f32.vlgmr.msra.gmra.mrb[32].mxu1 %v1031_v27  ;;  %v1267_v27 = vpop.permute.xlu1 %1266 }
 0x3e3   : > { %1571 = vmatprep.mubr.f32.mxu1 %v1032_v16  ;;  %v1262_v16 = vpop.permute.xlu0 %1261 }
 0x3e4   : > { %v1323_v36 = vmul.f32 %v1262_v16, %v2609_v42 }
 0x3e6   : > { %1572 = vmatmul.mubr.f32.gmra.mrb[34].mxu1 %v1033_v28 }
 0x3e7   : > { %1574 = vmatprep.mubr.f32.mxu1 %v1034_v29  ;;  %v1272_v11 = vpop.permute.xlu0 %1271 }
 0x3ea   : > { %1575 = vmatmul.mubr.f32.gmra.mrb[36].mxu1 %v1035_v33 }
 0x3eb   : > { %1577 = vmatprep.mubr.f32.mxu1 %v1036_v24  ;;  %v1282_v56 = vpop.permute.xlu0 %1281 }
 0x3ee   : > { %1578 = vmatmul.mubr.f32.gmra.mrb[38].mxu1 %v1037_v25  ;;  %v1277_v25 = vpop.permute.xlu1 %1276 }
 0x3ef   : > { %1580 = vmatprep.mubr.f32.mxu1 %v1038_v44  ;;  %v1292_v37 = vpop.permute.xlu0 %1291 }
 0x3f2   : > { %1581 = vmatmul.mubr.f32.gmra.mrb[40].mxu1 %v1039_v12 }
 0x3f3   : > { %1583 = vmatprep.mubr.f32.mxu1 %v1040_v45 }
 0x3f6   : > { %1584 = vmatmul.mubr.f32.gmra.mrb[42].mxu1 %v1041_v49 }
 0x3f7   : > { %1586 = vmatprep.mubr.f32.mxu1 %v1042_v50  ;;  %v1326_v50 = vmul.f32 %v1277_v25, %v2636_v52  ;;  %v1327_v52 = vmul.f32 %v1282_v56, %v2645_v22 }
 0x3fa   : > { %1587 = vmatmul.mubr.f32.gmra.mrb[44].mxu1 %v1043_v51 }
 0x3fb   : > { %1589 = vmatprep.mubr.f32.mxu1 %v1044_v35 }
 0x3fe   : > { %1590 = vmatmul.mubr.f32.gmra.mrb[46].mxu1 %v1045_v55 }
 0x4b5   : > { %v1570_v58 = vpop.f32.mrb[32].mxu1 }
 0x4b6   : > { %v1192_v61 = vmul.f32 %v1570_v58, %v2576_v48  ;;  %v1112_v40 = vpop.f32.mrb[33].mxu1 }
 0x4b7   : > { %v1191_v62 = vmul.f32 %v1112_v40, %v2567_v7  ;;  %v1324_v7 = vmul.f32 %v1267_v27, %v2618_v4  ;;  %v1325_v4 = vmul.f32 %v1272_v11, %v2627_v0 }
 0x4b8   : > { %v1336_v19 = vadd.f32 %v1320_v23, %v1192_v61 }
 0x4b9   : > { %v1335_v38 = vadd.f32 %v1319_v5, %v1191_v62  ;;  %v1573_v3 = vpop.f32.mrb[34].mxu1 }
 0x4ba   : > { %v1194_v14 = vmul.f32 %v1573_v3, %v2594_v59  ;;  %v1122_v20 = vpop.f32.mrb[35].mxu1 }
 0x4bb   : > { %v1351_v53 = vadd.f32 %v1336_v19, %v1335_v38  ;;  %v1193_v48 = vmul.f32 %v1122_v20, %v2585_v31 }
 0x4bc   : > { %v1338_v28 = vadd.f32 %v1322_v43, %v1194_v14 }
 0x4bd   : > { %v1337_v13 = vadd.f32 %v1321_v26, %v1193_v48  ;;  %v1576_v29 = vpop.f32.mrb[36].mxu1  ;;  %v1302_v26 = vpop.permute.xlu0 %1301 }
 0x4be   : > { %v1196_v33 = vmul.f32 %v1576_v29, %v2612_v47  ;;  %v1132_v24 = vpop.f32.mrb[37].mxu1  ;;  %v1287_v47 = vpop.permute.xlu1 %1286 }
 0x4bf   : > { %v1352_v59 = vadd.f32 %v1351_v53, %v1337_v13  ;;  %v1195_v44 = vmul.f32 %v1132_v24, %v2603_v18  ;;  %v1328_v23 = vmul.f32 %v1287_v47, %v2654_v6  ;;  %v1329_v6 = vmul.f32 %v1292_v37, %v2663_v15 }
 0x4c0   : > { %v1340_v12 = vadd.f32 %v1324_v7, %v1196_v33 }
 0x4c1   : > { %v1339_v45 = vadd.f32 %v1323_v36, %v1195_v44  ;;  %v1353_v49 = vadd.f32 %v1352_v59, %v1338_v28  ;;  %v1579_v31 = vpop.f32.mrb[38].mxu1  ;;  %v1312_v7 = vpop.permute.xlu0 %1311 }
 0x4c2   : > { %v1198_v51 = vmul.f32 %v1579_v31, %v2630_v39  ;;  %v1142_v35 = vpop.f32.mrb[39].mxu1  ;;  %v1297_v39 = vpop.permute.xlu1 %1296 }
 0x4c3   : > { %v1354_v55 = vadd.f32 %v1353_v49, %v1339_v45  ;;  %v1197_v42 = vmul.f32 %v1142_v35, %v2621_v32  ;;  %v1330_v3 = vmul.f32 %v1297_v39, %v2672_v17  ;;  %v1331_v17 = vmul.f32 %v1302_v26, %v2681_v34 }
 0x4c4   : > { %v1342_v57 = vadd.f32 %v1326_v50, %v1198_v51 }
 0x4c5   : > { %v1341_v10 = vadd.f32 %v1325_v4, %v1197_v42  ;;  %v1355_v18 = vadd.f32 %v1354_v55, %v1340_v12  ;;  %v1582_v58 = vpop.f32.mrb[40].mxu1 }
 0x4c6   : > { %v1200_v61 = vmul.f32 %v1582_v58, %v2648_v8  ;;  %v1152_v40 = vpop.f32.mrb[41].mxu1  ;;  %v1307_v8 = vpop.permute.xlu1 %1306 }
 0x4c7   : > { %v1356_v5 = vadd.f32 %v1355_v18, %v1341_v10  ;;  %v1199_v0 = vmul.f32 %v1152_v40, %v2639_v54  ;;  %v1332_v16 = vmul.f32 %v1307_v8, %v2690_v60  ;;  %v1333_v60 = vmul.f32 %v1312_v7, %v2699_v46 }
 0x4c8   : > { %v1344_v62 = vadd.f32 %v1328_v23, %v1200_v61 }
 0x4c9   : > { %v1343_v19 = vadd.f32 %v1327_v52, %v1199_v0  ;;  %v1357_v32 = vadd.f32 %v1356_v5, %v1342_v57  ;;  %v1585_v38 = vpop.f32.mrb[42].mxu1 }
 0x4ca   : > { %v1202_v43 = vmul.f32 %v1585_v38, %v2666_v2  ;;  %v1162_v14 = vpop.f32.mrb[43].mxu1  ;;  %v1317_v2 = vpop.permute.xlu1 %1316 }
 0x4cb   : > { %v1358_v20 = vadd.f32 %v1357_v32, %v1343_v19  ;;  %v1201_v22 = vmul.f32 %v1162_v14, %v2657_v63  ;;  %v1334_v25 = vmul.f32 %v1317_v2, %v2706_v21 }
 0x4cc   : > { %v1346_v27 = vadd.f32 %v1330_v3, %v1202_v43 }
 0x4cd   : > { %v1345_v53 = vadd.f32 %v1329_v6, %v1201_v22  ;;  %v1359_v54 = vadd.f32 %v1358_v20, %v1344_v62  ;;  %v1588_v48 = vpop.f32.mrb[44].mxu1 }
 0x4ce   : > { %v1204_v28 = vmul.f32 %v1588_v48, %v2684_v30  ;;  %v1172_v13 = vpop.f32.mrb[45].mxu1 }
 0x4cf   : > { %v1360_v29 = vadd.f32 %v1359_v54, %v1345_v53  ;;  %v1203_v15 = vmul.f32 %v1172_v13, %v2675_v1 }
 0x4d0   : > { %v1348_v33 = vadd.f32 %v1332_v16, %v1204_v28 }
 0x4d1   : > { %v1347_v24 = vadd.f32 %v1331_v17, %v1203_v15  ;;  %v1361_v63 = vadd.f32 %v1360_v29, %v1346_v27  ;;  %v1591_v36 = vpop.f32.mrb[46].mxu1 }
 0x4d2   : > { %v1206_v59 = vmul.f32 %v1591_v36, %v2702_v9  ;;  %v1182_v44 = vpop.f32.mrb[47].mxu1  ;;  %v1373_v9 = vstv %s1372_s18 }
 0x4d3   : > { %v1362_v30 = vadd.f32 %v1361_v63, %v1347_v24  ;;  %v1205_v11 = vmul.f32 %v1182_v44, %v2693_v41 }
 0x4d4   : > { %v1350_v34 = vadd.f32 %v1334_v25, %v1206_v59 }
 0x4d5   : > { %v1349_v12 = vadd.f32 %v1333_v60, %v1205_v11  ;;  %v1363_v45 = vadd.f32 %v1362_v30, %v1348_v33 }
 0x4d7   : > { %v1364_v49 = vadd.f32 %v1363_v45, %v1349_v12 }
 0x4d9   : > { %v1365_v1 = vadd.f32 %v1364_v49, %v1350_v34 }
 0x4db   : > { %v1366_v31 = vrot.slane %v1365_v1, 4 }
 0x4dd   : > { %v1367_v50 = vadd.f32 %v1366_v31, %v1365_v1 }
 0x4df   : > { %v1368_v51 = vrot.slane %v1367_v50, 2 }
 0x4e1   : > { %v1369_v21 = vadd.f32 %v1368_v51, %v1367_v50 }
 0x4e3   : > { %v1370_v35 = vrot.slane %v1369_v21, 1 }
 0x4e5   : > { %v1371_v4 = vadd.f32 %v1370_v35, %v1369_v21 }
 0x4e7   : > { %v1374_v46 = vadd.f32 %v1373_v9, %v1371_v4 }
 0x4e9   : > { %v1499_v47 = vmul.f32 -1.442695, %v1374_v46 }
 0x4eb   : > { %1795 = vpow2.f32 %v1499_v47 }
 0x4f5   : > { %v1796_v41 = vpop.eup %1795 }
 0x4f6   : > { %v1378_v55 = vadd.f32 1.0, %v1796_v41 }
 0x4f8   : > { %1797 = vrcp.f32 %v1378_v55 }
 0x502   : > { %v1798_v42 = vpop.eup %1797 }
 0x503   : > { %1381 = vst [vmem:[%s298_s19] sm:$0x1] %v1798_v42 }
 0x504   : > { %1917 = shalt.err (!%p1914_p0)
}
 0x505   : > { %s1918_s15 = scalar_lea.hbm %s2790_s29, 16  ;;  %s1922_s14 = scalar_lea.hbm %s2840_s6, 32 }
 0x506   : > { %p1919_p2 = scmp.ne.s32.totalorder %s2790_s29, %s1918_s15  ;;  %p1923_p8 = scmp.lt.u32.totalorder %s2790_s29, %s2840_s6 }
 0x507   : > { %p1924_p10 = scmp.lt.u32.totalorder %s1922_s14, %s1918_s15  ;;  %p1926_p3 = scmp.lt.u32.totalorder %s1918_s15, %s2790_s29 }
 0x508   : > { %p1920_p7 = pnand %p1919_p2, %p2859_p1 }
 0x509   : > { %p1925_p13 = por %p1924_p10, %p1923_p8 }
 0x50a   : > { %p1921_p12 = pneg %p1920_p7 }
 0x50b   : > { %p1927_p5 = por %p1926_p3, %p1925_p13 }
 0x50d   : > { %p1928_p4 = pnand %p1927_p5, %p1921_p12 }
 0x50f   : > { %1931 = shalt.err (!%p1928_p4)
}
 0x510   : > { %1730 = dma.vmem_to_hbm [thread:$0]  (%p2859_p1), %s2792_s20, 16, %s2790_s29, %s1383_s22  }
 0x511 PF: > { %s1407_s9 = sand.u32 1, %s1966_s23   ;;  %p2860_p6 = scmp.ne.s32.totalorder %s2849_s11, 0 }
 0x512   : > { %p2861_p9 = scmp.ge.s32.totalorder %s1978_s26, 2  ;;  %s1408_s18 = scalar_lea.sflag [#allocation5], %s1407_s9 }
 0x514   : > { %p1744_p11 = pnand %p2861_p9, %p2860_p6 }
 0x516   : > { %1961 = dma.done.wait (!%p1744_p11), %s1408_s18, 16  }
 0x517   : > { %1963 = vsyncadd (!%p1744_p11), %s1408_s18, 4294967280  ;;  %s2862_s16 = sld [smem:[#allocation15_spill]]  ;;  %p22_p0 = scmp.ge.s32.totalorder %s2053_s28, 4  }
 0x518   : > { %s2863_s23 = smov %s1970_s24  ;;  %s2864_s24 = smov %s1974_s25 }
 0x519   : > { %s2866_s26 = smov %s2053_s28  ;;  %24 = sbr.rel (!%p22_p0) target bundleno = 10 (0xa), region = 101 }
 0x51d   : > { %s2865_s25 = smov %s2862_s16 }
 0x520   :  { %1412 = vsyncpa [#allocation4], 1 }
 0x521   :  { %1414 = vsyncpa [#allocation4 + $0x1], 1 }
 0x522   :  { %1415 = vsyncpa [#allocation9], 1 }
 0x523   :  { %1417 = vsyncpa [#allocation9 + $0x1], 1 }
 0x524   :  { %1418 = vsyncpa [#allocation5], 1 }
 0x525   :  { %1420 = vsyncpa [#allocation5 + $0x1], 1 }
 0x526   :  { %1421 = vsyncpa [#allocation6], 1 }
 0x527   :  { %1423 = vsyncpa [#allocation6 + $0x1], 1 }

</bundles_post_ra>
